<compile_context>
chip_gen: v5e
topology: v5e:2x2
jax: 0.10.0
libtpu: 0.0.40
codegen_flags: <defaults>
</compile_context>

<pallas_src>
import jax
import jax.numpy as jnp
from jax import lax
from jax.experimental import pallas as pl
from jax.experimental.pallas import tpu as pltpu  # noqa: F401  (TPU backend)

# ----------------------------- model hyper-params -----------------------------
N_NODES = 32          # number of graph nodes
N_EDGES = 64          # number of (directed) edges
F_IN = 16             # dataset.num_features
HIDDEN = 8            # args.hidden
HEADS = 4             # args.heads
OUT_HEADS = 1         # args.output_heads
NUM_CLASSES = 8       # dataset.num_classes
KERNEL = 5            # self.kernel
NEG_SLOPE = 0.2       # GATConv LeakyReLU slope


# ------------------------------- Pallas kernels -------------------------------
def _masked_attention(feat, a_src_row, a_dst_row, mask_bias):
    """GAT attention + aggregation for one head.

    feat      : (N, F) transformed features
    a_src_row : (1, F) attention vector (source)
    a_dst_row : (1, F) attention vector (target)
    mask_bias : (N, N) additive mask (0 where edge j->i or self loop, else -1e30)
    returns   : (N, F) aggregated features
    """
    a_s = jnp.sum(feat * a_src_row, axis=-1, keepdims=True)   # (N, 1)
    a_d = jnp.sum(feat * a_dst_row, axis=-1, keepdims=True)   # (N, 1)
    scores = a_d + a_s.T                                       # scores[i,j] = a_d[i]+a_s[j]
    scores = jnp.maximum(scores, NEG_SLOPE * scores)           # LeakyReLU(0.2)
    scores = scores + mask_bias                                # additive mask (no select)
    m = jnp.max(scores, axis=-1, keepdims=True)
    e = jnp.exp(scores - m)
    inv = pl.reciprocal(jnp.sum(e, axis=-1, keepdims=True), approx=True)  # EUP slot
    alpha = e * inv                                            # softmax over sources
    return jnp.dot(alpha, feat, preferred_element_type=jnp.float32)


def gat_block_kernel(x_ref, mask_ref,
                     w1_ref, a1s_ref, a1d_ref, b1_ref,
                     w2_ref, a2s_ref, a2d_ref, b2_ref,
                     pw_ref, pb_ref,
                     x1_ref, g_ref):
    """Fused: GAT1 (all heads) -> ReLU -> GAT2 (1 head, mean) -> proj."""
    mask_bias = mask_ref[...]

    # ---- GAT layer 1: one matmul for all heads: (N,Fin)x(Fin,H*HID) ----
    feat1 = jnp.dot(x_ref[...], w1_ref[...], preferred_element_type=jnp.float32)
    a1s = a1s_ref[...]                                         # (H, HID)
    a1d = a1d_ref[...]
    head_outs = []
    for h in range(HEADS):                                     # static unroll over heads
        f_h = feat1[:, h * HIDDEN:(h + 1) * HIDDEN]            # (N, HID)
        head_outs.append(
            _masked_attention(f_h, a1s[h:h + 1, :], a1d[h:h + 1, :], mask_bias))
    h1 = jnp.concatenate(head_outs, axis=1) + b1_ref[...]      # concat heads -> (N, H*HID)
    h1 = jnp.maximum(h1, 0.0)                                  # ReLU

    # ---- GAT layer 2: single head, concat=False (mean of one head == the head) ----
    feat2 = jnp.dot(h1, w2_ref[...], preferred_element_type=jnp.float32)   # (N, C)
    x1 = _masked_attention(feat2, a2s_ref[...], a2d_ref[...], mask_bias) + b2_ref[...]
    x1_ref[...] = x1

    # ---- proj: Linear(C, 1) as a lane reduction ----
    g_ref[...] = jnp.sum(x1 * pw_ref[...], axis=-1, keepdims=True) + pb_ref[...]


def sort_conv_lin_kernel(idx_ref, x1_ref, g_ref,
                         c1w_ref, c1b_ref, c2w_ref, c2b_ref,
                         lw_ref, lb_ref, out_ref):
    """Fused: gather(sort) -> scale -> conv1d -> ReLU -> conv1d -> un-sort ->
    concat -> linear -> log_softmax."""
    N, C = x1_ref.shape
    K = KERNEL
    pad = (K - 1) // 2

    # Permutation matrix from sort indices: P[i, j] = 1 iff sort_idx[i] == j.
    cols = lax.broadcasted_iota(jnp.int32, (N, N), 1)
    P = (idx_ref[...] == cols).astype(jnp.float32)             # (N, N)

    x1 = x1_ref[...]
    # sorted_x = g_sorted * x1[sort_idx] == P @ (g * x1)  (perm commutes w/ elementwise)
    sorted_x = jnp.dot(P, g_ref[...] * x1, preferred_element_type=jnp.float32)

    def conv_same(s, w_mat, b_row):
        # 'same' padding along the node/sequence (sublane) axis, in-register.
        z = jnp.zeros((pad, C), jnp.float32)
        spad = jnp.concatenate([z, s, z], axis=0)              # (N + K - 1, C)
        # slab[n, k*C + ci] = spad[n + k, ci]  -> single (N, K*C) x (K*C, C) dot
        slab = jnp.concatenate([spad[k:k + N, :] for k in range(K)], axis=1)
        return jnp.dot(slab, w_mat, preferred_element_type=jnp.float32) + b_row

    y = jnp.maximum(conv_same(sorted_x, c1w_ref[...], c1b_ref[...]), 0.0)
    y = conv_same(y, c2w_ref[...], c2b_ref[...])

    # x2 = y[inverse_idx] == P.T @ y
    x2 = jnp.dot(P.T, y, preferred_element_type=jnp.float32)

    feats = jnp.concatenate([x1, x2], axis=1)                  # (N, 2C)
    logits = jnp.dot(feats, lw_ref[...], preferred_element_type=jnp.float32) + lb_ref[...]
    m = jnp.max(logits, axis=-1, keepdims=True)
    z = logits - m
    out_ref[...] = z - jnp.log(jnp.sum(jnp.exp(z), axis=-1, keepdims=True))


# ---------------------------- parameter preparation ----------------------------
def prepare_params(p):
    """One-time hoist of all reshapes / transposes out of the forward pass."""
    def conv_mat(w):  # (C_out, C_in, K) -> (K*C_in, C_out), row index = k*C_in + ci
        return jnp.transpose(w, (2, 1, 0)).reshape(KERNEL * NUM_CLASSES, NUM_CLASSES)

    return {
        "W1": p["W1"],                                   # (F_IN, H*HID)
        "a1_src": p["a1_src"],                           # (H, HID)
        "a1_dst": p["a1_dst"],                           # (H, HID)
        "b1": p["b1"].reshape(1, -1),                    # (1, H*HID)
        "W2": p["W2"],                                   # (H*HID, C)
        "a2_src": p["a2_src"].reshape(1, -1),            # (1, C)
        "a2_dst": p["a2_dst"].reshape(1, -1),            # (1, C)
        "b2": p["b2"].reshape(1, -1),                    # (1, C)
        "proj_w": p["proj_w"].reshape(1, -1),            # (1, C)
        "proj_b": p["proj_b"].reshape(1, 1),             # (1, 1)
        "c1_w": conv_mat(p["c1_w"]),                     # (K*C, C)
        "c1_b": p["c1_b"].reshape(1, -1),                # (1, C)
        "c2_w": conv_mat(p["c2_w"]),                     # (K*C, C)
        "c2_b": p["c2_b"].reshape(1, -1),                # (1, C)
        "lin_wT": p["lin_w"].T,                          # (2C, C)
        "lin_b": p["lin_b"].reshape(1, -1),              # (1, C)
    }


# --------------------------------- full forward --------------------------------
@jax.jit
def nlgat_forward(x, mask_bias, pp):
    N = x.shape[0]

    # Kernel A: GAT1 + ReLU + GAT2 + proj  (dropouts are identity in eval mode)
    x1, g = pl.pallas_call(
        gat_block_kernel,
        out_shape=(jax.ShapeDtypeStruct((N, NUM_CLASSES), jnp.float32),
                   jax.ShapeDtypeStruct((N, 1), jnp.float32)),
    )(x, mask_bias,
      pp["W1"], pp["a1_src"], pp["a1_dst"], pp["b1"],
      pp["W2"], pp["a2_src"], pp["a2_dst"], pp["b2"],
      pp["proj_w"], pp["proj_b"])

    # TODO(synk): argsort (data-dependent sort) stays in XLA glue; no clean Pallas sort
    # at this size.  torch.sort is ascending, as is jnp.argsort.
    sort_idx = jnp.argsort(g[:, 0]).astype(jnp.int32).reshape(N, 1)

    # Kernel B: gather/scale/conv1d/ReLU/conv1d/un-sort/concat/linear/log_softmax
    out = pl.pallas_call(
        sort_conv_lin_kernel,
        out_shape=jax.ShapeDtypeStruct((N, NUM_CLASSES), jnp.float32),
    )(sort_idx, x1, g,
      pp["c1_w"], pp["c1_b"], pp["c2_w"], pp["c2_b"],
      pp["lin_wT"], pp["lin_b"])
    return out


# ------------------------------------ main -------------------------------------
if __name__ == "__main__":
    key = jax.random.PRNGKey(0)
    ks = jax.random.split(key, 24)

    def nrm(k, shape):
        return (0.1 * jax.random.normal(k, shape)).astype(jnp.float32)

    params = {
        # conv1: GATConv(F_IN -> HIDDEN, heads=HEADS, concat=True)
        "W1": nrm(ks[0], (F_IN, HEADS * HIDDEN)),
        "a1_src": nrm(ks[1], (HEADS, HIDDEN)),
        "a1_dst": nrm(ks[2], (HEADS, HIDDEN)),
        "b1": nrm(ks[3], (HEADS * HIDDEN,)),
        # conv2: GATConv(HEADS*HIDDEN -> NUM_CLASSES, heads=OUT_HEADS, concat=False)
        "W2": nrm(ks[4], (HEADS * HIDDEN, OUT_HEADS * NUM_CLASSES)),
        "a2_src": nrm(ks[5], (OUT_HEADS, NUM_CLASSES)),
        "a2_dst": nrm(ks[6], (OUT_HEADS, NUM_CLASSES)),
        "b2": nrm(ks[7], (NUM_CLASSES,)),
        # proj: Linear(NUM_CLASSES, 1)
        "proj_w": nrm(ks[8], (1, NUM_CLASSES)),
        "proj_b": nrm(ks[9], (1,)),
        # conv1d / conv1d_2: Conv1d(NUM_CLASSES, NUM_CLASSES, 5, padding=2)
        "c1_w": nrm(ks[10], (NUM_CLASSES, NUM_CLASSES, KERNEL)),
        "c1_b": nrm(ks[11], (NUM_CLASSES,)),
        "c2_w": nrm(ks[12], (NUM_CLASSES, NUM_CLASSES, KERNEL)),
        "c2_b": nrm(ks[13], (NUM_CLASSES,)),
        # lin: Linear(2*NUM_CLASSES, NUM_CLASSES)
        "lin_w": nrm(ks[14], (NUM_CLASSES, 2 * NUM_CLASSES)),
        "lin_b": nrm(ks[15], (NUM_CLASSES,)),
    }
    prepped = prepare_params(params)

    # data.x and data.edge_index
    x = jax.random.normal(ks[16], (N_NODES, F_IN), jnp.float32)
    src = jax.random.randint(ks[17], (N_EDGES,), 0, N_NODES)
    dst = jax.random.randint(ks[18], (N_EDGES,), 0, N_NODES)
    edge_index = jnp.stack([src, dst])                          # (2, E)

    # dense adjacency mask: adj[i, j] = 1 iff edge j -> i; plus self loops;
    # precomputed once as an additive mask bias.
    adj = jnp.zeros((N_NODES, N_NODES), jnp.float32)
    adj = adj.at[edge_index[1], edge_index[0]].set(1.0)
    adj = jnp.maximum(adj, jnp.eye(N_NODES, dtype=jnp.float32))
    mask_bias = jnp.where(adj > 0.0, 0.0, -1e30).astype(jnp.float32)

    out = nlgat_forward(x, mask_bias, prepped)
    jax.block_until_ready(out)
    assert out.shape == (N_NODES, NUM_CLASSES)
    assert bool(jnp.all(jnp.isfinite(out)))
    print("KERNEL_OK")
</pallas_src>

<mosaic_0001>
module attributes {stable_mosaic.version = 11 : i64} {
  func.func @sort_conv_lin_kernel(%arg0: memref<32x1xi32, #tpu.memory_space<vmem>>, %arg1: memref<32x8xf32, #tpu.memory_space<vmem>>, %arg2: memref<32x1xf32, #tpu.memory_space<vmem>>, %arg3: memref<40x8xf32, #tpu.memory_space<vmem>>, %arg4: memref<1x8xf32, #tpu.memory_space<vmem>>, %arg5: memref<40x8xf32, #tpu.memory_space<vmem>>, %arg6: memref<1x8xf32, #tpu.memory_space<vmem>>, %arg7: memref<16x8xf32, #tpu.memory_space<vmem>>, %arg8: memref<1x8xf32, #tpu.memory_space<vmem>>, %arg9: memref<32x8xf32, #tpu.memory_space<vmem>>) attributes {dimension_semantics = [], scalar_prefetch = 0 : i64, scratch_operands = 0 : i64, tpu.core_type = #tpu.core_type<tc>} {
    %0 = tpu.iota {dimensions = array<i32: 1>} : vector<32x32xi32>
    %c0 = arith.constant 0 : index
    %c0_0 = arith.constant 0 : index
    %1 = vector.load %arg0[%c0, %c0_0] : memref<32x1xi32, #tpu.memory_space<vmem>>, vector<32x1xi32>
    %2 = vector.broadcast %1 : vector<32x1xi32> to vector<32x32xi32>
    %3 = arith.cmpi eq, %2, %0 : vector<32x32xi32>
    %4 = arith.extui %3 : vector<32x32xi1> to vector<32x32xi32>
    %5 = arith.sitofp %4 : vector<32x32xi32> to vector<32x32xf32>
    %c0_1 = arith.constant 0 : index
    %c0_2 = arith.constant 0 : index
    %6 = vector.load %arg1[%c0_1, %c0_2] : memref<32x8xf32, #tpu.memory_space<vmem>>, vector<32x8xf32>
    %c0_3 = arith.constant 0 : index
    %c0_4 = arith.constant 0 : index
    %7 = vector.load %arg2[%c0_3, %c0_4] : memref<32x1xf32, #tpu.memory_space<vmem>>, vector<32x1xf32>
    %8 = vector.broadcast %7 : vector<32x1xf32> to vector<32x8xf32>
    %9 = arith.mulf %8, %6 : vector<32x8xf32>
    %cst = arith.constant dense<0.000000e+00> : vector<32x8xf32>
    %10 = tpu.matmul %5, %9, %cst {dimension_numbers = #tpu.dot_dimension_numbers<[1], [0], [0], [1], [0, 0, 1, 1], [], []>} : vector<32x32xf32>, vector<32x8xf32>, vector<32x8xf32> -> vector<32x8xf32>
    %c0_5 = arith.constant 0 : index
    %c0_6 = arith.constant 0 : index
    %11 = vector.load %arg3[%c0_5, %c0_6] : memref<40x8xf32, #tpu.memory_space<vmem>>, vector<40x8xf32>
    %c0_7 = arith.constant 0 : index
    %c0_8 = arith.constant 0 : index
    %12 = vector.load %arg4[%c0_7, %c0_8] : memref<1x8xf32, #tpu.memory_space<vmem>>, vector<1x8xf32>
    %cst_9 = arith.constant 0.000000e+00 : f32
    %13 = vector.broadcast %cst_9 : f32 to vector<2x8xf32>
    %14 = tpu.concatenate %13, %10, %13 in 0 : vector<2x8xf32>, vector<32x8xf32>, vector<2x8xf32> -> vector<36x8xf32>
    %15 = vector.extract_strided_slice %14 {offsets = [0, 0], sizes = [32, 8], strides = [1, 1]} : vector<36x8xf32> to vector<32x8xf32>
    %16 = vector.extract_strided_slice %14 {offsets = [1, 0], sizes = [32, 8], strides = [1, 1]} : vector<36x8xf32> to vector<32x8xf32>
    %17 = vector.extract_strided_slice %14 {offsets = [2, 0], sizes = [32, 8], strides = [1, 1]} : vector<36x8xf32> to vector<32x8xf32>
    %18 = vector.extract_strided_slice %14 {offsets = [3, 0], sizes = [32, 8], strides = [1, 1]} : vector<36x8xf32> to vector<32x8xf32>
    %19 = vector.extract_strided_slice %14 {offsets = [4, 0], sizes = [32, 8], strides = [1, 1]} : vector<36x8xf32> to vector<32x8xf32>
    %20 = tpu.concatenate %15, %16, %17, %18, %19 in 1 : vector<32x8xf32>, vector<32x8xf32>, vector<32x8xf32>, vector<32x8xf32>, vector<32x8xf32> -> vector<32x40xf32>
    %cst_10 = arith.constant dense<0.000000e+00> : vector<32x8xf32>
    %21 = tpu.matmul %20, %11, %cst_10 {dimension_numbers = #tpu.dot_dimension_numbers<[1], [0], [0], [1], [0, 0, 1, 1], [], []>} : vector<32x40xf32>, vector<40x8xf32>, vector<32x8xf32> -> vector<32x8xf32>
    %22 = vector.broadcast %12 : vector<1x8xf32> to vector<32x8xf32>
    %23 = arith.addf %21, %22 : vector<32x8xf32>
    %cst_11 = arith.constant 0.000000e+00 : f32
    %24 = vector.broadcast %cst_11 : f32 to vector<32x8xf32>
    %25 = arith.maximumf %23, %24 : vector<32x8xf32>
    %c0_12 = arith.constant 0 : index
    %c0_13 = arith.constant 0 : index
    %26 = vector.load %arg5[%c0_12, %c0_13] : memref<40x8xf32, #tpu.memory_space<vmem>>, vector<40x8xf32>
    %c0_14 = arith.constant 0 : index
    %c0_15 = arith.constant 0 : index
    %27 = vector.load %arg6[%c0_14, %c0_15] : memref<1x8xf32, #tpu.memory_space<vmem>>, vector<1x8xf32>
    %cst_16 = arith.constant 0.000000e+00 : f32
    %28 = vector.broadcast %cst_16 : f32 to vector<2x8xf32>
    %29 = tpu.concatenate %28, %25, %28 in 0 : vector<2x8xf32>, vector<32x8xf32>, vector<2x8xf32> -> vector<36x8xf32>
    %30 = vector.extract_strided_slice %29 {offsets = [0, 0], sizes = [32, 8], strides = [1, 1]} : vector<36x8xf32> to vector<32x8xf32>
    %31 = vector.extract_strided_slice %29 {offsets = [1, 0], sizes = [32, 8], strides = [1, 1]} : vector<36x8xf32> to vector<32x8xf32>
    %32 = vector.extract_strided_slice %29 {offsets = [2, 0], sizes = [32, 8], strides = [1, 1]} : vector<36x8xf32> to vector<32x8xf32>
    %33 = vector.extract_strided_slice %29 {offsets = [3, 0], sizes = [32, 8], strides = [1, 1]} : vector<36x8xf32> to vector<32x8xf32>
    %34 = vector.extract_strided_slice %29 {offsets = [4, 0], sizes = [32, 8], strides = [1, 1]} : vector<36x8xf32> to vector<32x8xf32>
    %35 = tpu.concatenate %30, %31, %32, %33, %34 in 1 : vector<32x8xf32>, vector<32x8xf32>, vector<32x8xf32>, vector<32x8xf32>, vector<32x8xf32> -> vector<32x40xf32>
    %cst_17 = arith.constant dense<0.000000e+00> : vector<32x8xf32>
    %36 = tpu.matmul %35, %26, %cst_17 {dimension_numbers = #tpu.dot_dimension_numbers<[1], [0], [0], [1], [0, 0, 1, 1], [], []>} : vector<32x40xf32>, vector<40x8xf32>, vector<32x8xf32> -> vector<32x8xf32>
    %37 = vector.broadcast %27 : vector<1x8xf32> to vector<32x8xf32>
    %38 = arith.addf %36, %37 : vector<32x8xf32>
    %39 = tpu.transpose %5, [1, 0] : vector<32x32xf32> -> vector<32x32xf32>
    %cst_18 = arith.constant dense<0.000000e+00> : vector<32x8xf32>
    %40 = tpu.matmul %39, %38, %cst_18 {dimension_numbers = #tpu.dot_dimension_numbers<[1], [0], [0], [1], [0, 0, 1, 1], [], []>} : vector<32x32xf32>, vector<32x8xf32>, vector<32x8xf32> -> vector<32x8xf32>
    %41 = tpu.concatenate %6, %40 in 1 : vector<32x8xf32>, vector<32x8xf32> -> vector<32x16xf32>
    %c0_19 = arith.constant 0 : index
    %c0_20 = arith.constant 0 : index
    %42 = vector.load %arg7[%c0_19, %c0_20] : memref<16x8xf32, #tpu.memory_space<vmem>>, vector<16x8xf32>
    %cst_21 = arith.constant dense<0.000000e+00> : vector<32x8xf32>
    %43 = tpu.matmul %41, %42, %cst_21 {dimension_numbers = #tpu.dot_dimension_numbers<[1], [0], [0], [1], [0, 0, 1, 1], [], []>} : vector<32x16xf32>, vector<16x8xf32>, vector<32x8xf32> -> vector<32x8xf32>
    %c0_22 = arith.constant 0 : index
    %c0_23 = arith.constant 0 : index
    %44 = vector.load %arg8[%c0_22, %c0_23] : memref<1x8xf32, #tpu.memory_space<vmem>>, vector<1x8xf32>
    %45 = vector.broadcast %44 : vector<1x8xf32> to vector<32x8xf32>
    %46 = arith.addf %43, %45 : vector<32x8xf32>
    %cst_24 = arith.constant dense<0xFF800000> : vector<32xf32>
    %47 = vector.multi_reduction <maximumf>, %46, %cst_24 [1] : vector<32x8xf32> to vector<32xf32>
    %48 = vector.shape_cast %47 : vector<32xf32> to vector<32x1xf32>
    %49 = vector.broadcast %48 : vector<32x1xf32> to vector<32x8xf32>
    %50 = arith.subf %46, %49 : vector<32x8xf32>
    %51 = math.exp %50 : vector<32x8xf32>
    %cst_25 = arith.constant dense<0.000000e+00> : vector<32xf32>
    %52 = vector.multi_reduction <add>, %51, %cst_25 [1] : vector<32x8xf32> to vector<32xf32>
    %53 = vector.shape_cast %52 : vector<32xf32> to vector<32x1xf32>
    %54 = math.log %53 : vector<32x1xf32>
    %55 = vector.broadcast %54 : vector<32x1xf32> to vector<32x8xf32>
    %56 = arith.subf %50, %55 : vector<32x8xf32>
    %c0_26 = arith.constant 0 : index
    %c0_27 = arith.constant 0 : index
    %57 = vector.load %arg9[%c0_26, %c0_27] : memref<32x8xf32, #tpu.memory_space<vmem>>, vector<32x8xf32>
    tpu.vector_store %arg9[%c0_26, %c0_27], %56 {strides = array<i32>} : memref<32x8xf32, #tpu.memory_space<vmem>>, vector<32x8xf32>,
    return
  }
}

module attributes {stable_mosaic.version = 11 : i64} {
  func.func @gat_block_kernel(%arg0: memref<32x16xf32, #tpu.memory_space<vmem>>, %arg1: memref<32x32xf32, #tpu.memory_space<vmem>>, %arg2: memref<16x32xf32, #tpu.memory_space<vmem>>, %arg3: memref<4x8xf32, #tpu.memory_space<vmem>>, %arg4: memref<4x8xf32, #tpu.memory_space<vmem>>, %arg5: memref<1x32xf32, #tpu.memory_space<vmem>>, %arg6: memref<32x8xf32, #tpu.memory_space<vmem>>, %arg7: memref<1x8xf32, #tpu.memory_space<vmem>>, %arg8: memref<1x8xf32, #tpu.memory_space<vmem>>, %arg9: memref<1x8xf32, #tpu.memory_space<vmem>>, %arg10: memref<1x8xf32, #tpu.memory_space<vmem>>, %arg11: memref<1x1xf32, #tpu.memory_space<vmem>>, %arg12: memref<32x8xf32, #tpu.memory_space<vmem>>, %arg13: memref<32x1xf32, #tpu.memory_space<vmem>>) attributes {dimension_semantics = [], scalar_prefetch = 0 : i64, scratch_operands = 0 : i64, tpu.core_type = #tpu.core_type<tc>} {
    %c0 = arith.constant 0 : index
    %c0_0 = arith.constant 0 : index
    %0 = vector.load %arg1[%c0, %c0_0] : memref<32x32xf32, #tpu.memory_space<vmem>>, vector<32x32xf32>
    %c0_1 = arith.constant 0 : index
    %c0_2 = arith.constant 0 : index
    %1 = vector.load %arg0[%c0_1, %c0_2] : memref<32x16xf32, #tpu.memory_space<vmem>>, vector<32x16xf32>
    %c0_3 = arith.constant 0 : index
    %c0_4 = arith.constant 0 : index
    %2 = vector.load %arg2[%c0_3, %c0_4] : memref<16x32xf32, #tpu.memory_space<vmem>>, vector<16x32xf32>
    %cst = arith.constant dense<0.000000e+00> : vector<32x32xf32>
    %3 = tpu.matmul %1, %2, %cst {dimension_numbers = #tpu.dot_dimension_numbers<[1], [0], [0], [1], [0, 0, 1, 1], [], []>} : vector<32x16xf32>, vector<16x32xf32>, vector<32x32xf32> -> vector<32x32xf32>
    %c0_5 = arith.constant 0 : index
    %c0_6 = arith.constant 0 : index
    %4 = vector.load %arg3[%c0_5, %c0_6] : memref<4x8xf32, #tpu.memory_space<vmem>>, vector<4x8xf32>
    %c0_7 = arith.constant 0 : index
    %c0_8 = arith.constant 0 : index
    %5 = vector.load %arg4[%c0_7, %c0_8] : memref<4x8xf32, #tpu.memory_space<vmem>>, vector<4x8xf32>
    %6 = vector.extract_strided_slice %3 {offsets = [0, 0], sizes = [32, 8], strides = [1, 1]} : vector<32x32xf32> to vector<32x8xf32>
    %7 = vector.extract_strided_slice %4 {offsets = [0, 0], sizes = [1, 8], strides = [1, 1]} : vector<4x8xf32> to vector<1x8xf32>
    %8 = vector.extract_strided_slice %5 {offsets = [0, 0], sizes = [1, 8], strides = [1, 1]} : vector<4x8xf32> to vector<1x8xf32>
    %9 = vector.broadcast %7 : vector<1x8xf32> to vector<32x8xf32>
    %10 = arith.mulf %6, %9 : vector<32x8xf32>
    %cst_9 = arith.constant dense<0.000000e+00> : vector<32xf32>
    %11 = vector.multi_reduction <add>, %10, %cst_9 [1] : vector<32x8xf32> to vector<32xf32>
    %12 = vector.shape_cast %11 : vector<32xf32> to vector<32x1xf32>
    %13 = vector.broadcast %8 : vector<1x8xf32> to vector<32x8xf32>
    %14 = arith.mulf %6, %13 : vector<32x8xf32>
    %cst_10 = arith.constant dense<0.000000e+00> : vector<32xf32>
    %15 = vector.multi_reduction <add>, %14, %cst_10 [1] : vector<32x8xf32> to vector<32xf32>
    %16 = vector.shape_cast %15 : vector<32xf32> to vector<32x1xf32>
    %17 = tpu.transpose %12, [1, 0] : vector<32x1xf32> -> vector<1x32xf32>
    %18 = vector.broadcast %16 : vector<32x1xf32> to vector<32x32xf32>
    %19 = vector.broadcast %17 : vector<1x32xf32> to vector<32x32xf32>
    %20 = arith.addf %18, %19 : vector<32x32xf32>
    %cst_11 = arith.constant 2.000000e-01 : f32
    %21 = vector.broadcast %cst_11 : f32 to vector<32x32xf32>
    %22 = arith.mulf %21, %20 : vector<32x32xf32>
    %23 = arith.maximumf %20, %22 : vector<32x32xf32>
    %24 = arith.addf %23, %0 : vector<32x32xf32>
    %cst_12 = arith.constant dense<0xFF800000> : vector<32xf32>
    %25 = vector.multi_reduction <maximumf>, %24, %cst_12 [1] : vector<32x32xf32> to vector<32xf32>
    %26 = vector.shape_cast %25 : vector<32xf32> to vector<32x1xf32>
    %27 = vector.broadcast %26 : vector<32x1xf32> to vector<32x32xf32>
    %28 = arith.subf %24, %27 : vector<32x32xf32>
    %29 = math.exp %28 : vector<32x32xf32>
    %cst_13 = arith.constant dense<0.000000e+00> : vector<32xf32>
    %30 = vector.multi_reduction <add>, %29, %cst_13 [1] : vector<32x32xf32> to vector<32xf32>
    %31 = vector.shape_cast %30 : vector<32xf32> to vector<32x1xf32>
    %32 = tpu.reciprocal %31 {approx = true} : vector<32x1xf32> -> vector<32x1xf32>
    %33 = vector.broadcast %32 : vector<32x1xf32> to vector<32x32xf32>
    %34 = arith.mulf %29, %33 : vector<32x32xf32>
    %cst_14 = arith.constant dense<0.000000e+00> : vector<32x8xf32>
    %35 = tpu.matmul %34, %6, %cst_14 {dimension_numbers = #tpu.dot_dimension_numbers<[1], [0], [0], [1], [0, 0, 1, 1], [], []>} : vector<32x32xf32>, vector<32x8xf32>, vector<32x8xf32> -> vector<32x8xf32>
    %36 = vector.extract_strided_slice %3 {offsets = [0, 8], sizes = [32, 8], strides = [1, 1]} : vector<32x32xf32> to vector<32x8xf32>
    %37 = vector.extract_strided_slice %4 {offsets = [1, 0], sizes = [1, 8], strides = [1, 1]} : vector<4x8xf32> to vector<1x8xf32>
    %38 = vector.extract_strided_slice %5 {offsets = [1, 0], sizes = [1, 8], strides = [1, 1]} : vector<4x8xf32> to vector<1x8xf32>
    %39 = vector.broadcast %37 : vector<1x8xf32> to vector<32x8xf32>
    %40 = arith.mulf %36, %39 : vector<32x8xf32>
    %cst_15 = arith.constant dense<0.000000e+00> : vector<32xf32>
    %41 = vector.multi_reduction <add>, %40, %cst_15 [1] : vector<32x8xf32> to vector<32xf32>
    %42 = vector.shape_cast %41 : vector<32xf32> to vector<32x1xf32>
    %43 = vector.broadcast %38 : vector<1x8xf32> to vector<32x8xf32>
    %44 = arith.mulf %36, %43 : vector<32x8xf32>
    %cst_16 = arith.constant dense<0.000000e+00> : vector<32xf32>
    %45 = vector.multi_reduction <add>, %44, %cst_16 [1] : vector<32x8xf32> to vector<32xf32>
    %46 = vector.shape_cast %45 : vector<32xf32> to vector<32x1xf32>
    %47 = tpu.transpose %42, [1, 0] : vector<32x1xf32> -> vector<1x32xf32>
    %48 = vector.broadcast %46 : vector<32x1xf32> to vector<32x32xf32>
    %49 = vector.broadcast %47 : vector<1x32xf32> to vector<32x32xf32>
    %50 = arith.addf %48, %49 : vector<32x32xf32>
    %cst_17 = arith.constant 2.000000e-01 : f32
    %51 = vector.broadcast %cst_17 : f32 to vector<32x32xf32>
    %52 = arith.mulf %51, %50 : vector<32x32xf32>
    %53 = arith.maximumf %50, %52 : vector<32x32xf32>
    %54 = arith.addf %53, %0 : vector<32x32xf32>
    %cst_18 = arith.constant dense<0xFF800000> : vector<32xf32>
    %55 = vector.multi_reduction <maximumf>, %54, %cst_18 [1] : vector<32x32xf32> to vector<32xf32>
    %56 = vector.shape_cast %55 : vector<32xf32> to vector<32x1xf32>
    %57 = vector.broadcast %56 : vector<32x1xf32> to vector<32x32xf32>
    %58 = arith.subf %54, %57 : vector<32x32xf32>
    %59 = math.exp %58 : vector<32x32xf32>
    %cst_19 = arith.constant dense<0.000000e+00> : vector<32xf32>
    %60 = vector.multi_reduction <add>, %59, %cst_19 [1] : vector<32x32xf32> to vector<32xf32>
    %61 = vector.shape_cast %60 : vector<32xf32> to vector<32x1xf32>
    %62 = tpu.reciprocal %61 {approx = true} : vector<32x1xf32> -> vector<32x1xf32>
    %63 = vector.broadcast %62 : vector<32x1xf32> to vector<32x32xf32>
    %64 = arith.mulf %59, %63 : vector<32x32xf32>
    %cst_20 = arith.constant dense<0.000000e+00> : vector<32x8xf32>
    %65 = tpu.matmul %64, %36, %cst_20 {dimension_numbers = #tpu.dot_dimension_numbers<[1], [0], [0], [1], [0, 0, 1, 1], [], []>} : vector<32x32xf32>, vector<32x8xf32>, vector<32x8xf32> -> vector<32x8xf32>
    %66 = vector.extract_strided_slice %3 {offsets = [0, 16], sizes = [32, 8], strides = [1, 1]} : vector<32x32xf32> to vector<32x8xf32>
    %67 = vector.extract_strided_slice %4 {offsets = [2, 0], sizes = [1, 8], strides = [1, 1]} : vector<4x8xf32> to vector<1x8xf32>
    %68 = vector.extract_strided_slice %5 {offsets = [2, 0], sizes = [1, 8], strides = [1, 1]} : vector<4x8xf32> to vector<1x8xf32>
    %69 = vector.broadcast %67 : vector<1x8xf32> to vector<32x8xf32>
    %70 = arith.mulf %66, %69 : vector<32x8xf32>
    %cst_21 = arith.constant dense<0.000000e+00> : vector<32xf32>
    %71 = vector.multi_reduction <add>, %70, %cst_21 [1] : vector<32x8xf32> to vector<32xf32>
    %72 = vector.shape_cast %71 : vector<32xf32> to vector<32x1xf32>
    %73 = vector.broadcast %68 : vector<1x8xf32> to vector<32x8xf32>
    %74 = arith.mulf %66, %73 : vector<32x8xf32>
    %cst_22 = arith.constant dense<0.000000e+00> : vector<32xf32>
    %75 = vector.multi_reduction <add>, %74, %cst_22 [1] : vector<32x8xf32> to vector<32xf32>
    %76 = vector.shape_cast %75 : vector<32xf32> to vector<32x1xf32>
    %77 = tpu.transpose %72, [1, 0] : vector<32x1xf32> -> vector<1x32xf32>
    %78 = vector.broadcast %76 : vector<32x1xf32> to vector<32x32xf32>
    %79 = vector.broadcast %77 : vector<1x32xf32> to vector<32x32xf32>
    %80 = arith.addf %78, %79 : vector<32x32xf32>
    %cst_23 = arith.constant 2.000000e-01 : f32
    %81 = vector.broadcast %cst_23 : f32 to vector<32x32xf32>
    %82 = arith.mulf %81, %80 : vector<32x32xf32>
    %83 = arith.maximumf %80, %82 : vector<32x32xf32>
    %84 = arith.addf %83, %0 : vector<32x32xf32>
    %cst_24 = arith.constant dense<0xFF800000> : vector<32xf32>
    %85 = vector.multi_reduction <maximumf>, %84, %cst_24 [1] : vector<32x32xf32> to vector<32xf32>
    %86 = vector.shape_cast %85 : vector<32xf32> to vector<32x1xf32>
    %87 = vector.broadcast %86 : vector<32x1xf32> to vector<32x32xf32>
    %88 = arith.subf %84, %87 : vector<32x32xf32>
    %89 = math.exp %88 : vector<32x32xf32>
    %cst_25 = arith.constant dense<0.000000e+00> : vector<32xf32>
    %90 = vector.multi_reduction <add>, %89, %cst_25 [1] : vector<32x32xf32> to vector<32xf32>
    %91 = vector.shape_cast %90 : vector<32xf32> to vector<32x1xf32>
    %92 = tpu.reciprocal %91 {approx = true} : vector<32x1xf32> -> vector<32x1xf32>
    %93 = vector.broadcast %92 : vector<32x1xf32> to vector<32x32xf32>
    %94 = arith.mulf %89, %93 : vector<32x32xf32>
    %cst_26 = arith.constant dense<0.000000e+00> : vector<32x8xf32>
    %95 = tpu.matmul %94, %66, %cst_26 {dimension_numbers = #tpu.dot_dimension_numbers<[1], [0], [0], [1], [0, 0, 1, 1], [], []>} : vector<32x32xf32>, vector<32x8xf32>, vector<32x8xf32> -> vector<32x8xf32>
    %96 = vector.extract_strided_slice %3 {offsets = [0, 24], sizes = [32, 8], strides = [1, 1]} : vector<32x32xf32> to vector<32x8xf32>
    %97 = vector.extract_strided_slice %4 {offsets = [3, 0], sizes = [1, 8], strides = [1, 1]} : vector<4x8xf32> to vector<1x8xf32>
    %98 = vector.extract_strided_slice %5 {offsets = [3, 0], sizes = [1, 8], strides = [1, 1]} : vector<4x8xf32> to vector<1x8xf32>
    %99 = vector.broadcast %97 : vector<1x8xf32> to vector<32x8xf32>
    %100 = arith.mulf %96, %99 : vector<32x8xf32>
    %cst_27 = arith.constant dense<0.000000e+00> : vector<32xf32>
    %101 = vector.multi_reduction <add>, %100, %cst_27 [1] : vector<32x8xf32> to vector<32xf32>
    %102 = vector.shape_cast %101 : vector<32xf32> to vector<32x1xf32>
    %103 = vector.broadcast %98 : vector<1x8xf32> to vector<32x8xf32>
    %104 = arith.mulf %96, %103 : vector<32x8xf32>
    %cst_28 = arith.constant dense<0.000000e+00> : vector<32xf32>
    %105 = vector.multi_reduction <add>, %104, %cst_28 [1] : vector<32x8xf32> to vector<32xf32>
    %106 = vector.shape_cast %105 : vector<32xf32> to vector<32x1xf32>
    %107 = tpu.transpose %102, [1, 0] : vector<32x1xf32> -> vector<1x32xf32>
    %108 = vector.broadcast %106 : vector<32x1xf32> to vector<32x32xf32>
    %109 = vector.broadcast %107 : vector<1x32xf32> to vector<32x32xf32>
    %110 = arith.addf %108, %109 : vector<32x32xf32>
    %cst_29 = arith.constant 2.000000e-01 : f32
    %111 = vector.broadcast %cst_29 : f32 to vector<32x32xf32>
    %112 = arith.mulf %111, %110 : vector<32x32xf32>
    %113 = arith.maximumf %110, %112 : vector<32x32xf32>
    %114 = arith.addf %113, %0 : vector<32x32xf32>
    %cst_30 = arith.constant dense<0xFF800000> : vector<32xf32>
    %115 = vector.multi_reduction <maximumf>, %114, %cst_30 [1] : vector<32x32xf32> to vector<32xf32>
    %116 = vector.shape_cast %115 : vector<32xf32> to vector<32x1xf32>
    %117 = vector.broadcast %116 : vector<32x1xf32> to vector<32x32xf32>
    %118 = arith.subf %114, %117 : vector<32x32xf32>
    %119 = math.exp %118 : vector<32x32xf32>
    %cst_31 = arith.constant dense<0.000000e+00> : vector<32xf32>
    %120 = vector.multi_reduction <add>, %119, %cst_31 [1] : vector<32x32xf32> to vector<32xf32>
    %121 = vector.shape_cast %120 : vector<32xf32> to vector<32x1xf32>
    %122 = tpu.reciprocal %121 {approx = true} : vector<32x1xf32> -> vector<32x1xf32>
    %123 = vector.broadcast %122 : vector<32x1xf32> to vector<32x32xf32>
    %124 = arith.mulf %119, %123 : vector<32x32xf32>
    %cst_32 = arith.constant dense<0.000000e+00> : vector<32x8xf32>
    %125 = tpu.matmul %124, %96, %cst_32 {dimension_numbers = #tpu.dot_dimension_numbers<[1], [0], [0], [1], [0, 0, 1, 1], [], []>} : vector<32x32xf32>, vector<32x8xf32>, vector<32x8xf32> -> vector<32x8xf32>
    %126 = tpu.concatenate %35, %65, %95, %125 in 1 : vector<32x8xf32>, vector<32x8xf32>, vector<32x8xf32>, vector<32x8xf32> -> vector<32x32xf32>
    %c0_33 = arith.constant 0 : index
    %c0_34 = arith.constant 0 : index
    %127 = vector.load %arg5[%c0_33, %c0_34] : memref<1x32xf32, #tpu.memory_space<vmem>>, vector<1x32xf32>
    %128 = vector.broadcast %127 : vector<1x32xf32> to vector<32x32xf32>
    %129 = arith.addf %126, %128 : vector<32x32xf32>
    %cst_35 = arith.constant 0.000000e+00 : f32
    %130 = vector.broadcast %cst_35 : f32 to vector<32x32xf32>
    %131 = arith.maximumf %129, %130 : vector<32x32xf32>
    %c0_36 = arith.constant 0 : index
    %c0_37 = arith.constant 0 : index
    %132 = vector.load %arg6[%c0_36, %c0_37] : memref<32x8xf32, #tpu.memory_space<vmem>>, vector<32x8xf32>
    %cst_38 = arith.constant dense<0.000000e+00> : vector<32x8xf32>
    %133 = tpu.matmul %131, %132, %cst_38 {dimension_numbers = #tpu.dot_dimension_numbers<[1], [0], [0], [1], [0, 0, 1, 1], [], []>} : vector<32x32xf32>, vector<32x8xf32>, vector<32x8xf32> -> vector<32x8xf32>
    %c0_39 = arith.constant 0 : index
    %c0_40 = arith.constant 0 : index
    %134 = vector.load %arg7[%c0_39, %c0_40] : memref<1x8xf32, #tpu.memory_space<vmem>>, vector<1x8xf32>
    %c0_41 = arith.constant 0 : index
    %c0_42 = arith.constant 0 : index
    %135 = vector.load %arg8[%c0_41, %c0_42] : memref<1x8xf32, #tpu.memory_space<vmem>>, vector<1x8xf32>
    %136 = vector.broadcast %134 : vector<1x8xf32> to vector<32x8xf32>
    %137 = arith.mulf %133, %136 : vector<32x8xf32>
    %cst_43 = arith.constant dense<0.000000e+00> : vector<32xf32>
    %138 = vector.multi_reduction <add>, %137, %cst_43 [1] : vector<32x8xf32> to vector<32xf32>
    %139 = vector.shape_cast %138 : vector<32xf32> to vector<32x1xf32>
    %140 = vector.broadcast %135 : vector<1x8xf32> to vector<32x8xf32>
    %141 = arith.mulf %133, %140 : vector<32x8xf32>
    %cst_44 = arith.constant dense<0.000000e+00> : vector<32xf32>
    %142 = vector.multi_reduction <add>, %141, %cst_44 [1] : vector<32x8xf32> to vector<32xf32>
    %143 = vector.shape_cast %142 : vector<32xf32> to vector<32x1xf32>
    %144 = tpu.transpose %139, [1, 0] : vector<32x1xf32> -> vector<1x32xf32>
    %145 = vector.broadcast %143 : vector<32x1xf32> to vector<32x32xf32>
    %146 = vector.broadcast %144 : vector<1x32xf32> to vector<32x32xf32>
    %147 = arith.addf %145, %146 : vector<32x32xf32>
    %cst_45 = arith.constant 2.000000e-01 : f32
    %148 = vector.broadcast %cst_45 : f32 to vector<32x32xf32>
    %149 = arith.mulf %148, %147 : vector<32x32xf32>
    %150 = arith.maximumf %147, %149 : vector<32x32xf32>
    %151 = arith.addf %150, %0 : vector<32x32xf32>
    %cst_46 = arith.constant dense<0xFF800000> : vector<32xf32>
    %152 = vector.multi_reduction <maximumf>, %151, %cst_46 [1] : vector<32x32xf32> to vector<32xf32>
    %153 = vector.shape_cast %152 : vector<32xf32> to vector<32x1xf32>
    %154 = vector.broadcast %153 : vector<32x1xf32> to vector<32x32xf32>
    %155 = arith.subf %151, %154 : vector<32x32xf32>
    %156 = math.exp %155 : vector<32x32xf32>
    %cst_47 = arith.constant dense<0.000000e+00> : vector<32xf32>
    %157 = vector.multi_reduction <add>, %156, %cst_47 [1] : vector<32x32xf32> to vector<32xf32>
    %158 = vector.shape_cast %157 : vector<32xf32> to vector<32x1xf32>
    %159 = tpu.reciprocal %158 {approx = true} : vector<32x1xf32> -> vector<32x1xf32>
    %160 = vector.broadcast %159 : vector<32x1xf32> to vector<32x32xf32>
    %161 = arith.mulf %156, %160 : vector<32x32xf32>
    %cst_48 = arith.constant dense<0.000000e+00> : vector<32x8xf32>
    %162 = tpu.matmul %161, %133, %cst_48 {dimension_numbers = #tpu.dot_dimension_numbers<[1], [0], [0], [1], [0, 0, 1, 1], [], []>} : vector<32x32xf32>, vector<32x8xf32>, vector<32x8xf32> -> vector<32x8xf32>
    %c0_49 = arith.constant 0 : index
    %c0_50 = arith.constant 0 : index
    %163 = vector.load %arg9[%c0_49, %c0_50] : memref<1x8xf32, #tpu.memory_space<vmem>>, vector<1x8xf32>
    %164 = vector.broadcast %163 : vector<1x8xf32> to vector<32x8xf32>
    %165 = arith.addf %162, %164 : vector<32x8xf32>
    %c0_51 = arith.constant 0 : index
    %c0_52 = arith.constant 0 : index
    %166 = vector.load %arg12[%c0_51, %c0_52] : memref<32x8xf32, #tpu.memory_space<vmem>>, vector<32x8xf32>
    tpu.vector_store %arg12[%c0_51, %c0_52], %165 {strides = array<i32>} : memref<32x8xf32, #tpu.memory_space<vmem>>, vector<32x8xf32>,
    %c0_53 = arith.constant 0 : index
    %c0_54 = arith.constant 0 : index
    %167 = vector.load %arg10[%c0_53, %c0_54] : memref<1x8xf32, #tpu.memory_space<vmem>>, vector<1x8xf32>
    %168 = vector.broadcast %167 : vector<1x8xf32> to vector<32x8xf32>
    %169 = arith.mulf %165, %168 : vector<32x8xf32>
    %cst_55 = arith.constant dense<0.000000e+00> : vector<32xf32>
    %170 = vector.multi_reduction <add>, %169, %cst_55 [1] : vector<32x8xf32> to vector<32xf32>
    %171 = vector.shape_cast %170 : vector<32xf32> to vector<32x1xf32>
    %c0_56 = arith.constant 0 : index
    %c0_57 = arith.constant 0 : index
    %172 = vector.load %arg11[%c0_56, %c0_57] : memref<1x1xf32, #tpu.memory_space<vmem>>, vector<1x1xf32>
    %173 = vector.broadcast %172 : vector<1x1xf32> to vector<32x1xf32>
    %174 = arith.addf %171, %173 : vector<32x1xf32>
    %c0_58 = arith.constant 0 : index
    %c0_59 = arith.constant 0 : index
    %175 = vector.load %arg13[%c0_58, %c0_59] : memref<32x1xf32, #tpu.memory_space<vmem>>, vector<32x1xf32>
    tpu.vector_store %arg13[%c0_58, %c0_59], %174 {strides = array<i32>} : memref<32x1xf32, #tpu.memory_space<vmem>>, vector<32x1xf32>,
    return
  }
}

</mosaic_0001>

<bundles_post_ra>
// kernel: nlgat_forward.3
= control target key start
LH: loop header
LB: loop body
LE: loop exit
PB: predicated region body
PF: predicated region fallthrough
CT: control target
= control target key end

     0   :  { %v749_v0 = vmov 0   ;;  %v32_v14 = vlaneseq  ;;  %vm94_vm2 = vcmask 261120   ;;  %v750_v25 = vmov 0.0   ;;  %s752_s10 = smov 16   ;;  %s753_s11 = smov 8   ;;  %s1132_s2 = inlined_call_operand.vmem [shape: f32[32,1], index: 2, kind: input, shape index: {}]   ;;  %s1133_s0 = inlined_call_operand.vmem [shape: s32[32,1], index: 0, kind: input, shape index: {}]   ;;  %s1134_s1 = inlined_call_operand.vmem [shape: f32[32,8], index: 1, kind: input, shape index: {}]   ;;  %s1135_s4 = inlined_call_operand.vmem [shape: f32[1,8], index: 4, kind: input, shape index: {}]   ;;  %s1136_s3 = inlined_call_operand.vmem [shape: f32[40,8], index: 3, kind: input, shape index: {}]   ;;  %s1137_s6 = inlined_call_operand.vmem [shape: f32[1,8], index: 6, kind: input, shape index: {}]   ;;  %s1138_s5 = inlined_call_operand.vmem [shape: f32[40,8], index: 5, kind: input, shape index: {}]   ;;  %s1139_s7 = inlined_call_operand.vmem [shape: f32[16,8], index: 7, kind: input, shape index: {}]   ;;  %s1140_s8 = inlined_call_operand.vmem [shape: f32[1,8], index: 8, kind: input, shape index: {}]   ;;  %s1141_s9 = inlined_call_operand.vmem [shape: f32[32,8], index: 9, kind: output, shape index: {}]  }
   0x1   :  { %728 = vset.pattern.permute.xlu1 %v749_v0  ;;  %727 = vset.pattern.permute.xlu0 %v749_v0  ;;  %v69_v1 = vld [vmem:[%s1132_s2 + $0x18] sm:$0xff]  ;;  %v67_v2 = vld [vmem:[%s1132_s2 + $0x8] sm:$0xff]  ;;  %v34_v3 = vld [vmem:[%s1133_s0] sm:$0xff]  ;;  %vm146_vm5 = vcmask 1041408   ;;  %vm207_vm6 = vcmask 1044480   ;;  %vm185_vm7 = vcmask 1045504  }
   0x2   :  { %87 = vperm.xlu0 %727, %v69_v1   ;;  %77 = vperm.xlu1 %728, %v67_v2   ;;  %v68_v4 = vld [vmem:[%s1132_s2 + $0x10] sm:$0xff]  ;;  %v66_v5 = vld [vmem:[%s1132_s2] sm:$0xff]  ;;  %v35_v6 = vld [vmem:[%s1133_s0 + $0x8] sm:$0xff]  ;;  %v33_v19 = vand.u32 127, %v32_v14  ;;  %vm163_vm8 = vcmask 1046528   ;;  %vm229_vm9 = vcmask 1043456  }
   0x3   :  { %729 = vset.pattern.permute.xlu2 %v749_v0  ;;  %v37_v7 = vld [vmem:[%s1133_s0 + $0x18] sm:$0xff]  ;;  %v36_v8 = vld [vmem:[%s1133_s0 + $0x10] sm:$0xff]  ;;  %v843_v16 = vld [vmem:[%s1134_s1 + $0x8] sm:$0xff]  ;;  %s754_s12 = smov 32   ;;  %vm251_vm10 = vcmask 64512   ;;  %vm256_vm11 = vcmask 130048  }
   0x4   :  { %39 = vperm.xlu2 %729, %v34_v3   ;;  %v832_v9 = vld [vmem:[%s1134_s1 + $0x18] sm:$0xff]  ;;  %v838_v15 = vld [vmem:[%s1134_s1 + $0x10] sm:$0xff]  ;;  %v849_v22 = vld [vmem:[%s1134_s1] sm:$0xff]  ;;  %s751_s1 = smov 24   ;;  %vm261_vm12 = vcmask 195584   ;;  %vm273_vm13 = vcmask 326656  }
   0xa   :  { %82 = vperm.xlu0 %727, %v68_v4   ;;  %72 = vperm.xlu1 %728, %v66_v5  }
   0xc   :  { %42 = vperm.xlu2 %729, %v35_v6  }
  0x12   :  { %48 = vperm.xlu1 %728, %v37_v7   ;;  %45 = vperm.xlu0 %727, %v36_v8  }
  0x5e   :  { %v40_v10 = vpop.permute.xlu2 %39 }
  0x5f   :  { %vm50_vm0 = vcmp.eq.s32.totalorder %v40_v10, %v33_v19 }
  0x60   :  { %v853_v26 = vsel %vm50_vm0, 1.0, %v750_v25 }
  0x66   :  { %v43_v21 = vpop.permute.xlu2 %42 }
  0x67   :  { %vm51_vm1 = vcmp.eq.s32.totalorder %v43_v21, %v33_v19  ;;  %v139_v21 = vld [vmem:[%s1136_s3 + $0x18] sm:$0xff] }
  0x68   :  { %v855_v27 = vsel %vm51_vm1, 1.0, %v750_v25 }
  0x74   :  { %v88_v11 = vpop.permute.xlu0 %87  ;;  %v78_v12 = vpop.permute.xlu1 %77 }
  0x75   :  { %v93_v13 = vmul.f32 %v88_v11, %v832_v9  ;;  %v91_v23 = vmul.f32 %v78_v12, %v843_v16 }
  0x77   :  { %119 = vmatpush.msra.mxu0 %v93_v13  ;;  %709 = vmatpush.msra.mxu1 %v93_v13 }
  0x78   :  { %710 = vmatpush.msra.mxu2 %v93_v13  ;;  %711 = vmatpush.msra.mxu3 %v93_v13 }
  0x7c   :  { %v83_v17 = vpop.permute.xlu0 %82  ;;  %v73_v18 = vpop.permute.xlu1 %72 }
  0x7d   :  { %v92_v20 = vmul.f32 %v83_v17, %v838_v15  ;;  %v90_v24 = vmul.f32 %v73_v18, %v849_v22 }
  0x7f   :  { %120 = vmatpush.msra.mxu0 %v92_v20  ;;  %712 = vmatpush.msra.mxu1 %v92_v20 }
  0x80   :  { %713 = vmatpush.msra.mxu2 %v92_v20  ;;  %714 = vmatpush.msra.mxu3 %v92_v20  ;;  %v140_v20 = vld [vmem:[%s1136_s3 + $0x20] sm:$0xff] }
  0x81   :  { %121 = vmatpush.msra.mxu0 %v91_v23  ;;  %715 = vmatpush.msra.mxu1 %v91_v23 }
  0x82   :  { %716 = vmatpush.msra.mxu2 %v91_v23  ;;  %717 = vmatpush.msra.mxu3 %v91_v23  ;;  %v138_v23 = vld [vmem:[%s1136_s3 + $0x10] sm:$0xff] }
  0x83   :  { %122 = vmatpush.msra.mxu0 %v90_v24  ;;  %718 = vmatpush.msra.mxu1 %v90_v24 }
  0x84   :  { %719 = vmatpush.msra.mxu2 %v90_v24  ;;  %720 = vmatpush.msra.mxu3 %v90_v24  ;;  %v49_v28 = vpop.permute.xlu1 %48  ;;  %v46_v29 = vpop.permute.xlu0 %45  ;;  %v137_v24 = vld [vmem:[%s1136_s3 + $0x8] sm:$0xff] }
  0x85   :  { %vm53_vm3 = vcmp.eq.s32.totalorder %v49_v28, %v33_v19  ;;  %vm52_vm4 = vcmp.eq.s32.totalorder %v46_v29, %v33_v19  ;;  %689 = vmatmul.msk.f32.vlgmr.msra.gmra.mxu0 %vm94_vm2, %v853_v26  ;;  %690 = vmatmul.msk.f32.vlgmr.msra.gmra.mxu1 %vm94_vm2, %v855_v27 }
  0x86   :  { %v861_v30 = vsel %vm53_vm3, 1.0, %v750_v25  ;;  %v863_v31 = vsel %vm52_vm4, 1.0, %v750_v25  ;;  %297 = vmatpush.msrb.mxu1 %v140_v20  ;;  %v136_v25 = vld [vmem:[%s1136_s3] sm:$0xff] }
  0x87   :  { %691 = vmatmul.msk.f32.vlgmr.msra.gmra.mxu2 %vm94_vm2, %v863_v31  ;;  %692 = vmatmul.msk.f32.vlgmr.msra.gmra.mxu3 %vm94_vm2, %v861_v30 }
  0x88   :  { %298 = vmatpush.msrb.mxu1 %v139_v21 }
  0x8a   :  { %299 = vmatpush.msrb.mxu1 %v138_v23 }
  0x8c   :  { %300 = vmatpush.msrb.mxu1 %v137_v24 }
  0x8e   :  { %301 = vmatpush.msrb.mxu1 %v136_v25 }
 0x102   :  { %v124_v32 = vpop.f32.mrf.mxu0  ;;  %v127_v33 = vpop.f32.mrf.mxu1 }
 0x103   :  { %v147_v34 = vrot.slane %v124_v32, 6  ;;  %v148_v35 = vrot.slane %v127_v33, 6 }
 0x105   :  { %v870_v36 = vsel %vm146_vm5, 0.0, %v147_v34  ;;  %v873_v37 = vsel %vm146_vm5, %v147_v34, %v148_v35 }
 0x106   :  { %v208_v38 = vrot.slane %v870_v36, 3  ;;  %v209_v39 = vrot.slane %v873_v37, 3  ;;  %v186_v40 = vrot.slane %v870_v36, 2  ;;  %v187_v41 = vrot.slane %v873_v37, 2 }
 0x107   :  { %v164_v42 = vrot.slane %v870_v36, 1  ;;  %v165_v43 = vrot.slane %v873_v37, 1  ;;  %v230_v52 = vrot.slane %v870_v36, 4  ;;  %v231_v53 = vrot.slane %v873_v37, 4 }
 0x108   :  { %v210_v44 = vsel %vm207_vm6, %v208_v38, %v209_v39  ;;  %v188_v45 = vsel %vm185_vm7, %v186_v40, %v187_v41 }
 0x109   :  { %217 = vrot.lane.b32.xlu1 %v210_v44, %s751_s1  ;;  %195 = vrot.lane.b32.xlu0 %v188_v45, %s752_s10  ;;  %v166_v46 = vsel %vm163_vm8, %v164_v42, %v165_v43  ;;  %v232_v59 = vsel %vm229_vm9, %v230_v52, %v231_v53 }
 0x10a   :  { %173 = vrot.lane.b32.xlu2 %v166_v46, %s753_s11  ;;  %v130_v47 = vpop.f32.mrf.mxu2  ;;  %v133_v48 = vpop.f32.mrf.mxu3 }
 0x10b   :  { %v150_v49 = vrot.slane %v130_v47, 6  ;;  %v152_v51 = vrot.slane %v133_v48, 6 }
 0x10d   :  { %v888_v50 = vsel %vm146_vm5, %v148_v35, %v150_v49  ;;  %v897_v58 = vsel %vm146_vm5, %v150_v49, %v152_v51  ;;  %v160_v7 = vsel %vm146_vm5, %v152_v51, 0.0 }
 0x10e   :  { %v189_v54 = vrot.slane %v888_v50, 2  ;;  %v167_v55 = vrot.slane %v888_v50, 1  ;;  %v169_v60 = vrot.slane %v897_v58, 1  ;;  %v233_v61 = vrot.slane %v888_v50, 4 }
 0x10f   :  { %v211_v62 = vrot.slane %v888_v50, 3  ;;  %v235_v2 = vrot.slane %v897_v58, 4  ;;  %v213_v3 = vrot.slane %v897_v58, 3  ;;  %v191_v4 = vrot.slane %v897_v58, 2 }
 0x110   :  { %v190_v56 = vsel %vm185_vm7, %v187_v41, %v189_v54  ;;  %v168_v57 = vsel %vm163_vm8, %v165_v43, %v167_v55  ;;  %v170_v63 = vsel %vm163_vm8, %v167_v55, %v169_v60  ;;  %v234_v0 = vsel %vm229_vm9, %v231_v53, %v233_v61 }
 0x111   :  { %197 = vrot.lane.b32.xlu1 %v190_v56, %s752_s10  ;;  %175 = vrot.lane.b32.xlu0 %v168_v57, %s753_s11  ;;  %v212_v1 = vsel %vm207_vm6, %v209_v39, %v211_v62  ;;  %v236_v5 = vsel %vm229_vm9, %v233_v61, %v235_v2  ;;  %v214_v6 = vsel %vm207_vm6, %v211_v62, %v213_v3  ;;  %v215_v10 = vrot.slane %v160_v7, 3 }
 0x112   :  { %239 = vrot.lane.b32.xlu2 %v232_v59, %s754_s12  ;;  %v192_v8 = vsel %vm185_vm7, %v189_v54, %v191_v4  ;;  %v193_v11 = vrot.slane %v160_v7, 2  ;;  %v171_v12 = vrot.slane %v160_v7, 1  ;;  %v237_v18 = vrot.slane %v160_v7, 4 }
 0x113   :  { %v216_v13 = vsel %vm207_vm6, %v213_v3, %v215_v10 }
 0x114   :  { %v194_v14 = vsel %vm185_vm7, %v191_v4, %v193_v11  ;;  %v172_v17 = vsel %vm163_vm8, %v169_v60, %v171_v12  ;;  %v238_v19 = vsel %vm229_vm9, %v235_v2, %v237_v18 }
 0x119   :  { %177 = vrot.lane.b32.xlu1 %v170_v63, %s753_s11  ;;  %241 = vrot.lane.b32.xlu0 %v234_v0, %s754_s12  ;;  %v730_v63 = vld [vmem:[%s1135_s4] ss:$0 sm:$0xff] }
 0x11a   :  { %219 = vrot.lane.b32.xlu2 %v212_v1, %s751_s1 }
 0x121   :  { %243 = vrot.lane.b32.xlu1 %v236_v5, %s754_s12  ;;  %221 = vrot.lane.b32.xlu0 %v214_v6, %s751_s1 }
 0x122   :  { %199 = vrot.lane.b32.xlu2 %v192_v8, %s752_s10 }
 0x129   :  { %223 = vrot.lane.b32.xlu1 %v216_v13, %s751_s1  ;;  %201 = vrot.lane.b32.xlu0 %v194_v14, %s752_s10 }
 0x12a   :  { %179 = vrot.lane.b32.xlu2 %v172_v17, %s753_s11 }
 0x132   :  { %245 = vrot.lane.b32.xlu2 %v238_v19, %s754_s12 }
 0x164   :  { %v174_v28 = vpop.permute.xlu2 %173 }
 0x165   :  { %v252_v32 = vsel %vm251_vm10, %v870_v36, %v174_v28 }
 0x16c   :  { %v240_v29 = vpop.permute.xlu2 %239 }
 0x174   :  { %v220_v39 = vpop.permute.xlu2 %219 }
 0x17b   :  { %v218_v33 = vpop.permute.xlu1 %217  ;;  %v196_v34 = vpop.permute.xlu0 %195 }
 0x17c   :  { %v257_v35 = vsel %vm256_vm11, %v252_v32, %v196_v34  ;;  %v200_v44 = vpop.permute.xlu2 %199 }
 0x17d   :  { %v262_v38 = vsel %vm261_vm12, %v257_v35, %v218_v33 }
 0x17e   :  { %v266_v40 = vsel %vm94_vm2, %v262_v38, %v240_v29 }
 0x17f   :  { %693 = vmatmul.msk.f32.vlgmr.msrb.gmra.mxu1 %vm273_vm13, %v266_v40 }
 0x183   :  { %v198_v41 = vpop.permute.xlu1 %197  ;;  %v176_v42 = vpop.permute.xlu0 %175 }
 0x184   :  { %v253_v43 = vsel %vm251_vm10, %v873_v37, %v176_v42  ;;  %v180_v51 = vpop.permute.xlu2 %179 }
 0x185   :  { %v258_v36 = vsel %vm256_vm11, %v253_v43, %v198_v41  ;;  %v255_v56 = vsel %vm251_vm10, %v897_v58, %v180_v51 }
 0x186   :  { %v263_v47 = vsel %vm261_vm12, %v258_v36, %v220_v39 }
 0x18b   :  { %v178_v45 = vpop.permute.xlu1 %177  ;;  %v242_v46 = vpop.permute.xlu0 %241 }
 0x18c   :  { %v267_v48 = vsel %vm94_vm2, %v263_v47, %v242_v46  ;;  %v254_v49 = vsel %vm251_vm10, %v888_v50, %v178_v45  ;;  %v246_v61 = vpop.permute.xlu2 %245 }
 0x18d   :  { %694 = vmatmul.msk.f32.gmra.mxu1 %vm273_vm13, %v267_v48  ;;  %v259_v54 = vsel %vm256_vm11, %v254_v49, %v200_v44 }
 0x193   :  { %v244_v52 = vpop.permute.xlu1 %243  ;;  %v222_v53 = vpop.permute.xlu0 %221 }
 0x194   :  { %v264_v37 = vsel %vm261_vm12, %v259_v54, %v222_v53 }
 0x195   :  { %v268_v55 = vsel %vm94_vm2, %v264_v37, %v244_v52 }
 0x196   :  { %695 = vmatmul.msk.f32.gmra.mxu1 %vm273_vm13, %v268_v55 }
 0x19b   :  { %v224_v57 = vpop.permute.xlu1 %223  ;;  %v202_v59 = vpop.permute.xlu0 %201 }
 0x19c   :  { %v260_v60 = vsel %vm256_vm11, %v255_v56, %v202_v59 }
 0x19d   :  { %v265_v50 = vsel %vm261_vm12, %v260_v60, %v224_v57 }
 0x19e   :  { %v269_v62 = vsel %vm94_vm2, %v265_v50, %v246_v61 }
 0x19f   :  { %696 = vmatmul.msk.f32.gmra.mxu1 %vm273_vm13, %v269_v62 }
 0x1fc   :  { %v303_v0 = vpop.f32.mrf.mxu1 }
 0x1fd   :  { %v304_v1 = vadd.f32 %v730_v63, %v303_v0 }
 0x1ff   :  { %v315_v2 = vmax.f32 %v304_v1, 0.0  ;;  %v323_v1 = vld [vmem:[%s1138_s5 + $0x20] sm:$0xff] }
 0x200   :  { %471 = vmatpush.msrb.mxu2 %v323_v1 }
 0x201   :  { %v329_v3 = vrot.slane %v315_v2, 6  ;;  %v322_v2 = vld [vmem:[%s1138_s5 + $0x18] sm:$0xff] }
 0x202   :  { %472 = vmatpush.msrb.mxu2 %v322_v2 }
 0x203   :  { %v973_v6 = vsel %vm146_vm5, 0.0, %v329_v3 }
 0x204   :  { %v387_v10 = vrot.slane %v973_v6, 3  ;;  %v366_v11 = vrot.slane %v973_v6, 2  ;;  %v345_v14 = vrot.slane %v973_v6, 1  ;;  %v408_v32 = vrot.slane %v973_v6, 4 }
 0x20a   :  { %v306_v58 = vpop.f32.mrf.mxu1 }
 0x20b   :  { %v307_v4 = vadd.f32 %v730_v63, %v306_v58  ;;  %v320_v58 = vld [vmem:[%s1138_s5 + $0x8] sm:$0xff] }
 0x20d   :  { %v316_v5 = vmax.f32 %v307_v4, 0.0  ;;  %v319_v4 = vld [vmem:[%s1138_s5] sm:$0xff] }
 0x20f   :  { %v330_v7 = vrot.slane %v316_v5, 6 }
 0x211   :  { %v976_v8 = vsel %vm146_vm5, %v329_v3, %v330_v7  ;;  %v321_v3 = vld [vmem:[%s1138_s5 + $0x10] sm:$0xff] }
 0x212   :  { %v388_v12 = vrot.slane %v976_v8, 3  ;;  %v367_v13 = vrot.slane %v976_v8, 2  ;;  %v346_v17 = vrot.slane %v976_v8, 1  ;;  %v409_v28 = vrot.slane %v976_v8, 4  ;;  %473 = vmatpush.msrb.mxu2 %v321_v3 }
 0x213   :  { %v309_v18 = vpop.f32.mrf.mxu1 }
 0x214   :  { %v310_v19 = vadd.f32 %v730_v63, %v309_v18  ;;  %v389_v20 = vsel %vm207_vm6, %v387_v10, %v388_v12  ;;  %v368_v21 = vsel %vm185_vm7, %v366_v11, %v367_v13  ;;  %v347_v23 = vsel %vm163_vm8, %v345_v14, %v346_v17  ;;  %474 = vmatpush.msrb.mxu2 %v320_v58 }
 0x215   :  { %396 = vrot.lane.b32.xlu2 %v389_v20, %s751_s1  ;;  %375 = vrot.lane.b32.xlu1 %v368_v21, %s752_s10  ;;  %v410_v39 = vsel %vm229_vm9, %v408_v32, %v409_v28 }
 0x216   :  { %v317_v24 = vmax.f32 %v310_v19, 0.0  ;;  %354 = vrot.lane.b32.xlu0 %v347_v23, %s753_s11  ;;  %475 = vmatpush.msrb.mxu2 %v319_v4 }
 0x218   :  { %v332_v25 = vrot.slane %v317_v24, 6 }
 0x21a   :  { %v992_v29 = vsel %vm146_vm5, %v330_v7, %v332_v25 }
 0x21b   :  { %v369_v33 = vrot.slane %v992_v29, 2  ;;  %v348_v34 = vrot.slane %v992_v29, 1  ;;  %v390_v44 = vrot.slane %v992_v29, 3  ;;  %v411_v36 = vrot.slane %v992_v29, 4 }
 0x21c   :  { %v312_v35 = vpop.f32.mrf.mxu1 }
 0x21d   :  { %v313_v38 = vadd.f32 %v730_v63, %v312_v35  ;;  %v370_v40 = vsel %vm185_vm7, %v367_v13, %v369_v33  ;;  %v349_v41 = vsel %vm163_vm8, %v346_v17, %v348_v34  ;;  %v391_v47 = vsel %vm207_vm6, %v388_v12, %v390_v44 }
 0x21e   :  { %417 = vrot.lane.b32.xlu0 %v410_v39, %s754_s12  ;;  %377 = vrot.lane.b32.xlu2 %v370_v40, %s752_s10  ;;  %v412_v48 = vsel %vm229_vm9, %v409_v28, %v411_v36 }
 0x21f   :  { %v318_v42 = vmax.f32 %v313_v38, 0.0  ;;  %356 = vrot.lane.b32.xlu1 %v349_v41, %s753_s11 }
 0x221   :  { %v334_v43 = vrot.slane %v318_v42, 6 }
 0x223   :  { %v1006_v45 = vsel %vm146_vm5, %v332_v25, %v334_v43  ;;  %v342_v37 = vsel %vm146_vm5, %v334_v43, 0.0 }
 0x224   :  { %v350_v46 = vrot.slane %v1006_v45, 1  ;;  %v371_v51 = vrot.slane %v1006_v45, 2  ;;  %v392_v52 = vrot.slane %v1006_v45, 3  ;;  %v413_v53 = vrot.slane %v1006_v45, 4 }
 0x225   :  { %v352_v57 = vrot.slane %v342_v37, 1  ;;  %v373_v59 = vrot.slane %v342_v37, 2  ;;  %v394_v60 = vrot.slane %v342_v37, 3  ;;  %v415_v63 = vrot.slane %v342_v37, 4 }
 0x226   :  { %398 = vrot.lane.b32.xlu0 %v391_v47, %s751_s1  ;;  %v351_v49 = vsel %vm163_vm8, %v348_v34, %v350_v46  ;;  %v372_v54 = vsel %vm185_vm7, %v369_v33, %v371_v51  ;;  %v393_v55 = vsel %vm207_vm6, %v390_v44, %v392_v52  ;;  %v414_v56 = vsel %vm229_vm9, %v411_v36, %v413_v53 }
 0x227   :  { %419 = vrot.lane.b32.xlu1 %v412_v48, %s754_s12  ;;  %358 = vrot.lane.b32.xlu2 %v351_v49, %s753_s11  ;;  %v353_v61 = vsel %vm163_vm8, %v350_v46, %v352_v57  ;;  %v374_v50 = vsel %vm185_vm7, %v371_v51, %v373_v59  ;;  %v395_v62 = vsel %vm207_vm6, %v392_v52, %v394_v60  ;;  %v731_v46 = vld [vmem:[%s1137_s6] ss:$0 sm:$0xff] }
 0x228   :  { %v416_v0 = vsel %vm229_vm9, %v413_v53, %v415_v63 }
 0x22e   :  { %379 = vrot.lane.b32.xlu0 %v372_v54, %s752_s10 }
 0x22f   :  { %400 = vrot.lane.b32.xlu1 %v393_v55, %s751_s1  ;;  %421 = vrot.lane.b32.xlu2 %v414_v56, %s754_s12  ;;  %v583_v55 = vld [vmem:[%s1139_s7 + $0x8] sm:$0xff] }
 0x230   :  { %614 = vmatpush.msrb.mxu0 %v583_v55 }
 0x236   :  { %360 = vrot.lane.b32.xlu0 %v353_v61, %s753_s11  ;;  %v582_v61 = vld [vmem:[%s1139_s7] sm:$0xff] }
 0x237   :  { %381 = vrot.lane.b32.xlu1 %v374_v50, %s752_s10  ;;  %402 = vrot.lane.b32.xlu2 %v395_v62, %s751_s1 }
 0x238   :  { %615 = vmatpush.msrb.mxu0 %v582_v61 }
 0x23e   :  { %423 = vrot.lane.b32.xlu0 %v416_v0, %s754_s12 }
 0x26c   :  { %489 = vxpose.xlu1.b32.start [1/4] (short) (narrow) %v853_v26, 32 }
 0x26f   :  { %v397_v26 = vpop.permute.xlu2 %396 }
 0x274   :  { %490 = vxpose.xlu1.b32.cont [2/4] (short) (narrow) %v855_v27, 32 }
 0x278   :  { %v378_v12 = vpop.permute.xlu2 %377 }
 0x27c   :  { %491 = vxpose.xlu1.b32.cont [3/4] (short) (narrow) %v863_v31, 32 }
 0x284   :  { %492 = vxpose.xlu1.b32.end [4/4] (short) (narrow) %v861_v30, 32  ;;  %v359_v30 = vpop.permute.xlu2 %358 }
 0x285   :  { %v431_v23 = vsel %vm251_vm10, %v992_v29, %v359_v30 }
 0x287   :  { %v376_v5 = vpop.permute.xlu1 %375 }
 0x288   :  { %v355_v7 = vpop.permute.xlu0 %354 }
 0x289   :  { %v429_v10 = vsel %vm251_vm10, %v973_v6, %v355_v7 }
 0x28a   :  { %v433_v11 = vsel %vm256_vm11, %v429_v10, %v376_v5 }
 0x28b   :  { %v437_v14 = vsel %vm261_vm12, %v433_v11, %v397_v26 }
 0x28c   :  { %v422_v32 = vpop.permute.xlu2 %421 }
 0x290   :  { %v418_v13 = vpop.permute.xlu0 %417 }
 0x291   :  { %v441_v17 = vsel %vm94_vm2, %v437_v14, %v418_v13  ;;  %v357_v18 = vpop.permute.xlu1 %356 }
 0x292   :  { %697 = vmatmul.msk.f32.vlgmr.msrb.gmra.mxu2 %vm273_vm13, %v441_v17  ;;  %v430_v27 = vsel %vm251_vm10, %v976_v8, %v357_v18 }
 0x293   :  { %v434_v19 = vsel %vm256_vm11, %v430_v27, %v378_v12 }
 0x294   :  { %v403_v40 = vpop.permute.xlu2 %402 }
 0x298   :  { %v399_v31 = vpop.permute.xlu0 %398 }
 0x299   :  { %v438_v6 = vsel %vm261_vm12, %v434_v19, %v399_v31  ;;  %v420_v20 = vpop.permute.xlu1 %419 }
 0x29a   :  { %v442_v21 = vsel %vm94_vm2, %v438_v6, %v420_v20 }
 0x29b   :  { %698 = vmatmul.msk.f32.gmra.mxu2 %vm273_vm13, %v442_v21 }
 0x2a0   :  { %v380_v24 = vpop.permute.xlu0 %379 }
 0x2a1   :  { %v435_v25 = vsel %vm256_vm11, %v431_v23, %v380_v24  ;;  %v401_v28 = vpop.permute.xlu1 %400 }
 0x2a2   :  { %v439_v8 = vsel %vm261_vm12, %v435_v25, %v401_v28 }
 0x2a3   :  { %v443_v33 = vsel %vm94_vm2, %v439_v8, %v422_v32 }
 0x2a4   :  { %699 = vmatmul.msk.f32.gmra.mxu2 %vm273_vm13, %v443_v33 }
 0x2a8   :  { %v361_v34 = vpop.permute.xlu0 %360 }
 0x2a9   :  { %v432_v35 = vsel %vm251_vm10, %v1006_v45, %v361_v34  ;;  %v382_v38 = vpop.permute.xlu1 %381 }
 0x2aa   :  { %v436_v39 = vsel %vm256_vm11, %v432_v35, %v382_v38 }
 0x2ab   :  { %v440_v41 = vsel %vm261_vm12, %v436_v39, %v403_v40 }
 0x2b0   :  { %v424_v29 = vpop.permute.xlu0 %423 }
 0x2b1   :  { %v444_v42 = vsel %vm94_vm2, %v440_v41, %v424_v29 }
 0x2b2   :  { %700 = vmatmul.msk.f32.gmra.mxu2 %vm273_vm13, %v444_v42 }
 0x310   :  { %v505_v48 = vpop.trf.xlu1 }
 0x315   :  { %v477_v43 = vpop.f32.mrf.mxu2 }
 0x316   :  { %v478_v52 = vadd.f32 %v731_v46, %v477_v43 }
 0x318   :  { %v506_v53 = vpop.trf.xlu1 }
 0x31e   :  { %v480_v44 = vpop.f32.mrf.mxu2 }
 0x31f   :  { %v481_v51 = vadd.f32 %v731_v46, %v480_v44 }
 0x320   :  { %v507_v54 = vpop.trf.xlu1 }
 0x327   :  { %v483_v36 = vpop.f32.mrf.mxu2 }
 0x328   :  { %v484_v49 = vadd.f32 %v731_v46, %v483_v36  ;;  %v508_v37 = vpop.trf.xlu1 }
 0x335   :  { %v486_v47 = vpop.f32.mrf.mxu2 }
 0x336   :  { %v487_v45 = vadd.f32 %v731_v46, %v486_v47 }
 0x338   :  { %545 = vmatpush.msrb.mxu3 %v487_v45 }
 0x33a   :  { %546 = vmatpush.msrb.mxu3 %v484_v49 }
 0x33c   :  { %547 = vmatpush.msrb.mxu3 %v481_v51 }
 0x33e   :  { %548 = vmatpush.msrb.mxu3 %v478_v52 }
 0x33f   :  { %701 = vmatmul.msk.f32.vlgmr.msrb.gmra.mxu3 %vm94_vm2, %v505_v48 }
 0x347   :  { %702 = vmatmul.msk.f32.gmra.mxu3 %vm94_vm2, %v506_v53 }
 0x34f   :  { %703 = vmatmul.msk.f32.gmra.mxu3 %vm94_vm2, %v507_v54 }
 0x357   :  { %704 = vmatmul.msk.f32.gmra.mxu3 %vm94_vm2, %v508_v37 }
 0x3c2   :  { %v550_v56 = vpop.f32.mrf.mxu3 }
 0x3c3   :  { %566 = vrot.lane.b32.xlu2 %v550_v56, %s753_s11 }
 0x3ca   :  { %v553_v57 = vpop.f32.mrf.mxu3 }
 0x3cb   :  { %568 = vrot.lane.b32.xlu0 %v553_v57, %s753_s11 }
 0x3d2   :  { %v556_v59 = vpop.f32.mrf.mxu3 }
 0x3d3   :  { %570 = vrot.lane.b32.xlu2 %v556_v59, %s753_s11 }
 0x3da   :  { %v559_v60 = vpop.f32.mrf.mxu3 }
 0x3db   :  { %572 = vrot.lane.b32.xlu0 %v559_v60, %s753_s11 }
 0x41d   :  { %v567_v50 = vpop.permute.xlu2 %566 }
 0x41e   :  { %v578_v62 = vsel %vm251_vm10, %v849_v22, %v567_v50  ;;  %v732_v22 = vld [vmem:[%s1140_s8] ss:$0 sm:$0xff] }
 0x41f   :  { %705 = vmatmul.msk.f32.vlgmr.msrb.gmra.mxu0 %vm256_vm11, %v578_v62 }
 0x42d   :  { %v571_v1 = vpop.permute.xlu2 %570 }
 0x42e   :  { %v580_v2 = vsel %vm251_vm10, %v838_v15, %v571_v1 }
 0x43d   :  { %v569_v63 = vpop.permute.xlu0 %568 }
 0x43e   :  { %v579_v0 = vsel %vm251_vm10, %v843_v16, %v569_v63 }
 0x43f   :  { %706 = vmatmul.msk.f32.gmra.mxu0 %vm256_vm11, %v579_v0 }
 0x447   :  { %707 = vmatmul.msk.f32.gmra.mxu0 %vm256_vm11, %v580_v2 }
 0x44d   :  { %v573_v3 = vpop.permute.xlu0 %572 }
 0x44e   :  { %v581_v58 = vsel %vm251_vm10, %v832_v9, %v573_v3 }
 0x44f   :  { %708 = vmatmul.msk.f32.gmra.mxu0 %vm256_vm11, %v581_v58 }
 0x49c   :  { %v617_v4 = vpop.f32.mrf.mxu0 }
 0x49d   :  { %v618_v16 = vadd.f32 %v732_v22, %v617_v4 }
 0x49f   :  { %v629_v26 = vsel %vm251_vm10, %v618_v16, -inf }
 0x4a0   :  { %630 = vmax.xlane.f32.xlu2 %v629_v26 }
 0x4bc   :  { %v620_v5 = vpop.f32.mrf.mxu0 }
 0x4bd   :  { %v621_v7 = vadd.f32 %v732_v22, %v620_v5 }
 0x4bf   :  { %v632_v15 = vsel %vm251_vm10, %v621_v7, -inf }
 0x4c0   :  { %633 = vmax.xlane.f32.xlu0 %v632_v15 }
 0x4c4   :  { %v623_v10 = vpop.f32.mrf.mxu0 }
 0x4c5   :  { %v624_v11 = vadd.f32 %v732_v22, %v623_v10 }
 0x4c7   :  { %v635_v9 = vsel %vm251_vm10, %v624_v11, -inf }
 0x4c8   :  { %636 = vmax.xlane.f32.xlu2 %v635_v9 }
 0x4cc   :  { %v626_v12 = vpop.f32.mrf.mxu0 }
 0x4cd   :  { %v627_v13 = vadd.f32 %v732_v22, %v626_v12 }
 0x4cf   :  { %v638_v14 = vsel %vm251_vm10, %v627_v13, -inf }
 0x4d0   :  { %639 = vmax.xlane.f32.xlu2 %v638_v14 }
 0x513   :  { %v631_v17 = vpop.xlane.xlu2 %630 }
 0x514   :  { %v641_v18 = vsub.f32 %v618_v16, %v631_v17 }
 0x516   :  { %v645_v27 = vmul.f32 1.442695, %v641_v18 }
 0x518   :  { %733 = vpow2.f32 %v645_v27 }
 0x51e   :  { %v734_v30 = vpop.eup %733 }
 0x51f   :  { %v653_v31 = vsel %vm251_vm10, %v734_v30, 0.0 }
 0x520   :  { %654 = vadd.xlane.f32.xlu0 %v653_v31 }
 0x533   :  { %v634_v19 = vpop.xlane.xlu0 %633 }
 0x534   :  { %v642_v6 = vsub.f32 %v621_v7, %v634_v19 }
 0x536   :  { %v647_v20 = vmul.f32 1.442695, %v642_v6 }
 0x538   :  { %735 = vpow2.f32 %v647_v20 }
 0x53b   :  { %v637_v21 = vpop.xlane.xlu2 %636 }
 0x53c   :  { %v643_v23 = vsub.f32 %v624_v11, %v637_v21 }
 0x53e   :  { %v736_v24 = vpop.eup %735  ;;  %v649_v25 = vmul.f32 1.442695, %v643_v23 }
 0x53f   :  { %v656_v28 = vsel %vm251_vm10, %v736_v24, 0.0 }
 0x540   :  { %737 = vpow2.f32 %v649_v25  ;;  %657 = vadd.xlane.f32.xlu2 %v656_v28 }
 0x543   :  { %v640_v32 = vpop.xlane.xlu2 %639 }
 0x544   :  { %v644_v8 = vsub.f32 %v627_v13, %v640_v32 }
 0x546   :  { %v738_v33 = vpop.eup %737  ;;  %v651_v34 = vmul.f32 1.442695, %v644_v8 }
 0x547   :  { %v659_v35 = vsel %vm251_vm10, %v738_v33, 0.0 }
 0x548   :  { %739 = vpow2.f32 %v651_v34  ;;  %660 = vadd.xlane.f32.xlu0 %v659_v35 }
 0x54e   :  { %v740_v38 = vpop.eup %739 }
 0x54f   :  { %v662_v39 = vsel %vm251_vm10, %v740_v38, 0.0 }
 0x550   :  { %663 = vadd.xlane.f32.xlu1 %v662_v39 }
 0x593   :  { %v655_v40 = vpop.xlane.xlu0 %654 }
 0x594   :  { %741 = vlog2.f32 %v655_v40 }
 0x59a   :  { %v742_v29 = vpop.eup %741 }
 0x59b   :  { %v666_v41 = vmul.f32 0.6931472, %v742_v29 }
 0x59d   :  { %v673_v42 = vsub.f32 %v641_v18, %v666_v41 }
 0x59f   :  { %677 = vst.msk [vmem:[%s1141_s9] sm:$0xff] %vm251_vm10, %v673_v42 }
 0x5b3   :  { %v658_v43 = vpop.xlane.xlu2 %657 }
 0x5b4   :  { %743 = vlog2.f32 %v658_v43 }
 0x5ba   :  { %v744_v44 = vpop.eup %743 }
 0x5bb   :  { %v668_v36 = vmul.f32 0.6931472, %v744_v44  ;;  %v661_v46 = vpop.xlane.xlu0 %660 }
 0x5bc   :  { %745 = vlog2.f32 %v661_v46 }
 0x5bd   :  { %v674_v47 = vsub.f32 %v642_v6, %v668_v36 }
 0x5bf   :  { %678 = vst.msk [vmem:[%s1141_s9 + $0x8] sm:$0xff] %vm251_vm10, %v674_v47 }
 0x5c2   :  { %v746_v45 = vpop.eup %745 }
 0x5c3   :  { %v670_v48 = vmul.f32 0.6931472, %v746_v45  ;;  %v664_v49 = vpop.xlane.xlu1 %663 }
 0x5c4   :  { %747 = vlog2.f32 %v664_v49 }
 0x5c5   :  { %v675_v51 = vsub.f32 %v643_v23, %v670_v48 }
 0x5c7   :  { %679 = vst.msk [vmem:[%s1141_s9 + $0x10] sm:$0xff] %vm251_vm10, %v675_v51 }
 0x5ca   :  { %v748_v52 = vpop.eup %747 }
 0x5cb   :  { %v672_v53 = vmul.f32 0.6931472, %v748_v52 }
 0x5cd   :  { %v676_v54 = vsub.f32 %v644_v8, %v672_v53 }
 0x5cf   :  { %680 = vst.msk [vmem:[%s1141_s9 + $0x18] sm:$0xff] %vm251_vm10, %v676_v54 }

// kernel: nlgat_forward.2
= control target key start
LH: loop header
LB: loop body
LE: loop exit
PB: predicated region body
PF: predicated region fallthrough
CT: control target
= control target key end

     0   :  { %vm55_vm0 = vcmask 130048   ;;  %s1434_s18 = smov 16   ;;  %s1435_s19 = smov 8   ;;  %vm104_vm1 = vcmask 64512   ;;  %vm183_vm2 = vcmask 261120   ;;  %vm989_vm3 = vcmask 195584   ;;  %s2050_s2 = inlined_call_operand.vmem [shape: f32[16,32], index: 2, kind: input, shape index: {}]   ;;  %s2051_s0 = inlined_call_operand.vmem [shape: f32[32,16], index: 0, kind: input, shape index: {}]   ;;  %s2052_s3 = inlined_call_operand.vmem [shape: f32[4,8], index: 3, kind: input, shape index: {}]   ;;  %s2053_s4 = inlined_call_operand.vmem [shape: f32[4,8], index: 4, kind: input, shape index: {}]   ;;  %s2054_s1 = inlined_call_operand.vmem [shape: f32[32,32], index: 1, kind: input, shape index: {}]   ;;  %s2055_s5 = inlined_call_operand.vmem [shape: f32[1,32], index: 5, kind: input, shape index: {}]   ;;  %s2056_s6 = inlined_call_operand.vmem [shape: f32[32,8], index: 6, kind: input, shape index: {}]   ;;  %s2057_s7 = inlined_call_operand.vmem [shape: f32[1,8], index: 7, kind: input, shape index: {}]   ;;  %s2058_s8 = inlined_call_operand.vmem [shape: f32[1,8], index: 8, kind: input, shape index: {}]   ;;  %s2059_s9 = inlined_call_operand.vmem [shape: f32[1,8], index: 9, kind: input, shape index: {}]   ;;  %s2060_s10 = inlined_call_operand.vmem [shape: f32[1,8], index: 10, kind: input, shape index: {}]   ;;  %s2061_s11 = inlined_call_operand.<no memory space> [shape: f32[1,1], index: 11, kind: input, shape index: {}]   ;;  %s2062_s12 = inlined_call_operand.vmem [shape: f32[32,8], index: 12, kind: output, shape index: {0}]   ;;  %s2063_s13 = inlined_call_operand.vmem [shape: f32[32,1], index: 13, kind: output, shape index: {1}]  }
   0x1   :  { %v54_v0 = vld [vmem:[%s2050_s2 + $0x8] sm:$0xff]  ;;  %v53_v1 = vld [vmem:[%s2050_s2] sm:$0xff]  ;;  %s1433_s2 = smov 24   ;;  %v51_v12 = vld [vmem:[%s2051_s0 + $0x10] sm:$0xff]  ;;  %s1437_s24 = smov 112   ;;  %vm1261_vm4 = vcmask 7168  }
   0x2   :  { %82 = vmatpush.msra.mxu0 %v54_v0  ;;  %v49_v2 = vld [vmem:[%s2051_s0] sm:$0xff]  ;;  %v50_v9 = vld [vmem:[%s2051_s0 + $0x8] sm:$0xff]  ;;  %v52_v13 = vld [vmem:[%s2051_s0 + $0x18] sm:$0xff]  ;;  %s1436_s0 = smov 104   ;;  %s1438_s25 = smov 120  }
   0x3   :  { %v97_v3 = vld [vmem:[%s2052_s3] sm:$0xf] }
   0x4   :  { %v713_v4 = vperm.slane %v97_v3, 3  ;;  %v493_v5 = vperm.slane %v97_v3, 2  ;;  %v98_v6 = vld [vmem:[%s2053_s4] sm:$0xf]  ;;  %83 = vmatpush.msra.mxu0 %v53_v1  ;;  %v269_v10 = vperm.slane %v97_v3, 1  ;;  %v1562_v25 = vperm.slane %v97_v3, 0 }
   0x5   :  { %v306_v7 = vperm.slane %v98_v6, 1  ;;  %1274 = vmatmul.msk.f32.vlgmr.msra.gmra.mxu0 %vm55_vm0, %v49_v2  ;;  %v530_v8 = vperm.slane %v98_v6, 2  ;;  %v750_v11 = vperm.slane %v98_v6, 3  ;;  %v1549_v17 = vperm.slane %v98_v6, 0 }
   0x6   :  { %715 = vrot.lane.b32.xlu1 %v713_v4, %s1433_s2  ;;  %495 = vrot.lane.b32.xlu0 %v493_v5, %s1434_s18 }
   0x7   :  { %308 = vrot.lane.b32.xlu2 %v306_v7, %s1435_s19 }
   0xd   :  { %1275 = vmatmul.msk.f32.gmra.mxu0 %vm55_vm0, %v50_v9 }
   0xe   :  { %532 = vrot.lane.b32.xlu1 %v530_v8, %s1434_s18  ;;  %271 = vrot.lane.b32.xlu0 %v269_v10, %s1435_s19 }
   0xf   :  { %752 = vrot.lane.b32.xlu2 %v750_v11, %s1433_s2 }
  0x15   :  { %1276 = vmatmul.msk.f32.gmra.mxu0 %vm55_vm0, %v51_v12 }
  0x1d   :  { %1277 = vmatmul.msk.f32.gmra.mxu0 %vm55_vm0, %v52_v13 }
  0x61   :  { %v1560_v23 = vpop.permute.xlu2 %308 }
  0x69   :  { %v1577_v32 = vpop.permute.xlu2 %752 }
  0x78   :  { %v1543_v14 = vpop.permute.xlu0 %495  ;;  %v1545_v15 = vpop.permute.xlu1 %715 }
  0x80   :  { %v1547_v16 = vpop.permute.xlu0 %271  ;;  %v533_v24 = vpop.permute.xlu1 %532 }
  0x82   :  { %v85_v18 = vpop.f32.mrf.mxu0 }
  0x83   :  { %v718_v19 = vmul.f32 %v1545_v15, %v85_v18  ;;  %v498_v20 = vmul.f32 %v1543_v14, %v85_v18  ;;  %v274_v21 = vmul.f32 %v1547_v16, %v85_v18  ;;  %v1555_v22 = vmul.f32 %v1549_v17, %v85_v18 }
  0x84   :  { %v311_v27 = vmul.f32 %v1560_v23, %v85_v18  ;;  %v535_v29 = vmul.f32 %v533_v24, %v85_v18  ;;  %v755_v36 = vmul.f32 %v1577_v32, %v85_v18  ;;  %v100_v44 = vmul.f32 %v1562_v25, %v85_v18 }
  0x85   :  { %726 = vrot.lane.b32.xlu1 %v718_v19, %s1436_s0  ;;  %506 = vrot.lane.b32.xlu0 %v498_v20, %s1437_s24 }
  0x86   :  { %282 = vrot.lane.b32.xlu2 %v274_v21, %s1438_s25  ;;  %v105_v45 = vsel %vm104_vm1, %v100_v44, 0.0 }
  0x8a   :  { %v1564_v26 = vpop.f32.mrf.mxu0 }
  0x8b   :  { %v312_v28 = vmul.f32 %v1560_v23, %v1564_v26  ;;  %v101_v30 = vmul.f32 %v1562_v25, %v1564_v26  ;;  %v1574_v31 = vpack.i.bf16 %v85_v18, %v1564_v26  ;;  %v499_v34 = vmul.f32 %v1543_v14, %v1564_v26 }
  0x8c   :  { %v719_v40 = vmul.f32 %v1545_v15, %v1564_v26  ;;  %v536_v42 = vmul.f32 %v533_v24, %v1564_v26  ;;  %v756_v43 = vmul.f32 %v1577_v32, %v1564_v26  ;;  %v275_v48 = vmul.f32 %v1547_v16, %v1564_v26 }
  0x8d   :  { %319 = vrot.lane.b32.xlu1 %v311_v27, %s1438_s25  ;;  %321 = vrot.lane.b32.xlu0 %v312_v28, %s1438_s25  ;;  %v108_v49 = vsel %vm104_vm1, %v101_v30, 0.0  ;;  %v119_v61 = vmul.f32 %v1549_v17, %v1564_v26 }
  0x8e   :  { %543 = vrot.lane.b32.xlu2 %v535_v29, %s1437_s24 }
  0x8f   :  { %v125_v0 = vsel %vm104_vm1, %v119_v61, 0.0 }
  0x92   :  { %v1579_v33 = vpop.f32.mrf.mxu0 }
  0x93   :  { %v500_v35 = vmul.f32 %v1543_v14, %v1579_v33  ;;  %v313_v37 = vmul.f32 %v1560_v23, %v1579_v33  ;;  %v1590_v38 = vmul.f32 %v1549_v17, %v1579_v33  ;;  %v720_v41 = vmul.f32 %v1545_v15, %v1579_v33 }
  0x94   :  { %v102_v46 = vmul.f32 %v1562_v25, %v1579_v33  ;;  %v276_v51 = vmul.f32 %v1547_v16, %v1579_v33  ;;  %v537_v53 = vmul.f32 %v533_v24, %v1579_v33  ;;  %v757_v55 = vmul.f32 %v1577_v32, %v1579_v33 }
  0x95   :  { %508 = vrot.lane.b32.xlu1 %v499_v34, %s1437_s24  ;;  %510 = vrot.lane.b32.xlu0 %v500_v35, %s1437_s24  ;;  %v128_v28 = vsel %vm104_vm1, %v1590_v38, 0.0 }
  0x96   :  { %763 = vrot.lane.b32.xlu2 %v755_v36, %s1436_s0  ;;  %v111_v47 = vsel %vm104_vm1, %v102_v46, 0.0 }
  0x9a   :  { %v1595_v39 = vpop.f32.mrf.mxu0 }
  0x9b   :  { %252 = vmatpush.msra.mxu1 %v1595_v39  ;;  %1302 = vmatpush.msra.mxu3 %v1595_v39  ;;  %v501_v50 = vmul.f32 %v1543_v14, %v1595_v39  ;;  %v721_v52 = vmul.f32 %v1545_v15, %v1595_v39  ;;  %v277_v54 = vmul.f32 %v1547_v16, %v1595_v39 }
  0x9c   :  { %v538_v56 = vmul.f32 %v533_v24, %v1595_v39  ;;  %v103_v57 = vmul.f32 %v1562_v25, %v1595_v39  ;;  %v314_v8 = vmul.f32 %v1560_v23, %v1595_v39 }
  0x9d   :  { %728 = vrot.lane.b32.xlu1 %v719_v40, %s1436_s0  ;;  %730 = vrot.lane.b32.xlu0 %v720_v41, %s1436_s0  ;;  %v121_v40 = vmul.f32 %v1549_v17, %v1595_v39 }
  0x9e   :  { %253 = vmatpush.msra.mxu1 %v1579_v33  ;;  %1303 = vmatpush.msra.mxu3 %v1579_v33  ;;  %v114_v58 = vsel %vm104_vm1, %v103_v57, 0.0 }
  0x9f   :  { %v131_v38 = vsel %vm104_vm1, %v121_v40, 0.0 }
  0xa0   :  { %254 = vmatpush.msra.mxu1 %v1564_v26  ;;  %1304 = vmatpush.msra.mxu3 %v1564_v26 }
  0xa2   :  { %255 = vmatpush.msra.mxu1 %v85_v18  ;;  %1305 = vmatpush.msra.mxu3 %v85_v18 }
  0xa5   :  { %545 = vrot.lane.b32.xlu1 %v536_v42, %s1437_s24 }
  0xad   :  { %765 = vrot.lane.b32.xlu1 %v756_v43, %s1436_s0  ;;  %v122_v43 = vsel %vm104_vm1, %v1555_v22, 0.0 }
  0xbf   :  { %106 = vadd.xlane.f32.xlu2 %v105_v45 }
  0xc7   :  { %112 = vadd.xlane.f32.xlu0 %v111_v47 }
  0xd7   :  { %284 = vrot.lane.b32.xlu2 %v275_v48, %s1438_s25  ;;  %109 = vadd.xlane.f32.xlu1 %v108_v49 }
  0xdb   :  { %512 = vrot.lane.b32.xlu0 %v501_v50, %s1437_s24 }
  0xdf   :  { %286 = vrot.lane.b32.xlu2 %v276_v51, %s1438_s25 }
  0xe0   :  { %v283_v63 = vpop.permute.xlu2 %282 }
  0xe1   :  { %v294_v30 = vsel %vm104_vm1, %v283_v63, 0.0 }
  0xe3   :  { %732 = vrot.lane.b32.xlu0 %v721_v52, %s1436_s0 }
  0xe7   :  { %323 = vrot.lane.b32.xlu2 %v313_v37, %s1438_s25 }
  0xe8   :  { %v544_v2 = vpop.permute.xlu2 %543 }
  0xe9   :  { %v555_v46 = vsel %vm104_vm1, %v544_v2, 0.0 }
  0xeb   :  { %547 = vrot.lane.b32.xlu0 %v537_v53, %s1437_s24 }
  0xf0   :  { %288 = vrot.lane.b32.xlu1 %v277_v54, %s1438_s25  ;;  %v764_v6 = vpop.permute.xlu2 %763 }
  0xf1   :  { %v775_v41 = vsel %vm104_vm1, %v764_v6, 0.0 }
  0xf7   :  { %v727_v59 = vpop.permute.xlu1 %726  ;;  %v507_v60 = vpop.permute.xlu0 %506 }
  0xf8   :  { %767 = vrot.lane.b32.xlu1 %v757_v55, %s1436_s0  ;;  %v518_v62 = vsel %vm104_vm1, %v507_v60, 0.0  ;;  %v738_v36 = vsel %vm104_vm1, %v727_v59, 0.0 }
  0xff   :  { %v320_v1 = vpop.permute.xlu1 %319  ;;  %v322_v4 = vpop.permute.xlu0 %321 }
 0x100   :  { %549 = vrot.lane.b32.xlu1 %v538_v56, %s1437_s24  ;;  %v331_v37 = vsel %vm104_vm1, %v320_v1, 0.0  ;;  %v334_v48 = vsel %vm104_vm1, %v322_v4, 0.0  ;;  %v758_v4 = vmul.f32 %v1577_v32, %v1595_v39 }
 0x107   :  { %v509_v3 = vpop.permute.xlu1 %508  ;;  %v511_v11 = vpop.permute.xlu0 %510 }
 0x108   :  { %v521_v5 = vsel %vm104_vm1, %v509_v3, 0.0  ;;  %v524_v12 = vsel %vm104_vm1, %v511_v11, 0.0  ;;  %v1688_v11 = vld [vmem:[%s2054_s1 + $0x8] sm:$0xff] }
 0x10f   :  { %v729_v7 = vpop.permute.xlu1 %728  ;;  %v731_v15 = vpop.permute.xlu0 %730 }
 0x110   :  { %115 = vadd.xlane.f32.xlu2 %v114_v58  ;;  %v741_v9 = vsel %vm104_vm1, %v729_v7, 0.0  ;;  %v744_v21 = vsel %vm104_vm1, %v731_v15, 0.0 }
 0x115   :  { %519 = vadd.xlane.f32.xlu0 %v518_v62 }
 0x117   :  { %v546_v20 = vpop.permute.xlu1 %545 }
 0x118   :  { %126 = vadd.xlane.f32.xlu2 %v125_v0  ;;  %v558_v22 = vsel %vm104_vm1, %v546_v20, 0.0 }
 0x11f   :  { %v766_v25 = vpop.permute.xlu1 %765 }
 0x120   :  { %v778_v52 = vsel %vm104_vm1, %v766_v25, 0.0 }
 0x12a   :  { %522 = vadd.xlane.f32.xlu1 %v521_v5 }
 0x130   :  { %325 = vrot.lane.b32.xlu2 %v314_v8, %s1438_s25 }
 0x132   :  { %v107_v10 = vpop.xlane.xlu2 %106  ;;  %742 = vadd.xlane.f32.xlu1 %v741_v9 }
 0x13a   :  { %v285_v13 = vpop.permute.xlu2 %284  ;;  %525 = vadd.xlane.f32.xlu1 %v524_v12  ;;  %v113_v19 = vpop.xlane.xlu0 %112 }
 0x13b   :  { %v297_v14 = vsel %vm104_vm1, %v285_v13, 0.0 }
 0x13c   :  { %298 = vadd.xlane.f32.xlu0 %v297_v14 }
 0x142   :  { %v287_v16 = vpop.permute.xlu2 %286 }
 0x143   :  { %v300_v18 = vsel %vm104_vm1, %v287_v16, 0.0 }
 0x144   :  { %301 = vadd.xlane.f32.xlu0 %v300_v18 }
 0x14a   :  { %v110_v29 = vpop.xlane.xlu1 %109  ;;  %v324_v42 = vpop.permute.xlu2 %323 }
 0x14b   :  { %v337_v44 = vsel %vm104_vm1, %v324_v42, 0.0 }
 0x14c   :  { %745 = vadd.xlane.f32.xlu0 %v744_v21 }
 0x14d   :  { %v513_v23 = vpop.permute.xlu0 %512 }
 0x14e   :  { %v527_v24 = vsel %vm104_vm1, %v513_v23, 0.0 }
 0x14f   :  { %528 = vadd.xlane.f32.xlu1 %v527_v24 }
 0x155   :  { %v733_v26 = vpop.permute.xlu0 %732 }
 0x156   :  { %v747_v27 = vsel %vm104_vm1, %v733_v26, 0.0  ;;  %v1708_v26 = vld [vmem:[%s2054_s1] sm:$0xff] }
 0x157   :  { %748 = vadd.xlane.f32.xlu0 %v747_v27 }
 0x159   :  { %129 = vadd.xlane.f32.xlu2 %v128_v28 }
 0x15d   :  { %v548_v45 = vpop.permute.xlu0 %547 }
 0x15e   :  { %v561_v47 = vsel %vm104_vm1, %v548_v45, 0.0 }
 0x161   :  { %295 = vadd.xlane.f32.xlu2 %v294_v30 }
 0x162   :  { %v289_v34 = vpop.permute.xlu1 %288 }
 0x163   :  { %v303_v35 = vsel %vm104_vm1, %v289_v34, 0.0 }
 0x164   :  { %304 = vadd.xlane.f32.xlu1 %v303_v35 }
 0x169   :  { %739 = vadd.xlane.f32.xlu2 %v738_v36 }
 0x16a   :  { %v768_v53 = vpop.permute.xlu1 %767 }
 0x16b   :  { %v781_v36 = vsel %vm104_vm1, %v768_v53, 0.0 }
 0x16c   :  { %332 = vadd.xlane.f32.xlu1 %v331_v37 }
 0x171   :  { %132 = vadd.xlane.f32.xlu2 %v131_v38 }
 0x172   :  { %v1680_v54 = vpop.permute.xlu1 %549 }
 0x173   :  { %v564_v42 = vsel %vm104_vm1, %v1680_v54, 0.0 }
 0x174   :  { %776 = vadd.xlane.f32.xlu1 %v775_v41 }
 0x179   :  { %123 = vadd.xlane.f32.xlu2 %v122_v43 }
 0x17c   :  { %338 = vadd.xlane.f32.xlu1 %v337_v44  ;;  %v1721_v44 = vld [vmem:[%s2054_s1 + $0x10] sm:$0xff] }
 0x180   :  { %134 = vxpose.xlu0.b32.start [1/4] (short) (narrow) %v107_v10, 8 }
 0x181   :  { %556 = vadd.xlane.f32.xlu2 %v555_v46 }
 0x183   :  { %v116_v17 = vpop.xlane.xlu2 %115 }
 0x184   :  { %562 = vadd.xlane.f32.xlu1 %v561_v47 }
 0x188   :  { %135 = vxpose.xlu0.b32.cont [2/4] (short) (narrow) %v110_v29, 8  ;;  %v520_v56 = vpop.xlane.xlu0 %519 }
 0x189   :  { %335 = vadd.xlane.f32.xlu2 %v334_v48 }
 0x18b   :  { %v127_v49 = vpop.xlane.xlu2 %126 }
 0x190   :  { %136 = vxpose.xlu0.b32.cont [3/4] (short) (narrow) %v113_v19, 8  ;;  %v1698_v19 = vld [vmem:[%s2054_s1 + $0x18] sm:$0xff] }
 0x191   :  { %559 = vadd.xlane.f32.xlu2 %v558_v22 }
 0x193   :  { %v326_v50 = vpop.permute.xlu2 %325 }
 0x194   :  { %v340_v51 = vsel %vm104_vm1, %v326_v50, 0.0 }
 0x195   :  { %341 = vadd.xlane.f32.xlu1 %v340_v51 }
 0x198   :  { %137 = vxpose.xlu0.b32.end [4/4] (short) (narrow) %v116_v17, 8 }
 0x199   :  { %779 = vadd.xlane.f32.xlu2 %v778_v52 }
 0x19d   :  { %v523_v55 = vpop.xlane.xlu1 %522 }
 0x1a5   :  { %v743_v57 = vpop.xlane.xlu1 %742 }
 0x1ad   :  { %v526_v59 = vpop.xlane.xlu1 %525 }
 0x1af   :  { %v299_v62 = vpop.xlane.xlu0 %298 }
 0x1b7   :  { %v302_v0 = vpop.xlane.xlu0 %301 }
 0x1bf   :  { %v746_v2 = vpop.xlane.xlu0 %745 }
 0x1c2   :  { %567 = vxpose.xlu2.b32.start [1/4] (short) (narrow) %v520_v56, 8  ;;  %v529_v61 = vpop.xlane.xlu1 %528 }
 0x1ca   :  { %568 = vxpose.xlu2.b32.cont [2/4] (short) (narrow) %v523_v55, 8  ;;  %v749_v3 = vpop.xlane.xlu0 %748 }
 0x1cc   :  { %v130_v58 = vpop.xlane.xlu2 %129 }
 0x1d2   :  { %569 = vxpose.xlu2.b32.cont [3/4] (short) (narrow) %v526_v59, 8 }
 0x1d4   :  { %v296_v60 = vpop.xlane.xlu2 %295 }
 0x1d5   :  { %343 = vxpose.xlu1.b32.start [1/4] (short) (narrow) %v296_v60, 8 }
 0x1d7   :  { %v305_v1 = vpop.xlane.xlu1 %304 }
 0x1da   :  { %570 = vxpose.xlu2.b32.end [4/4] (short) (narrow) %v529_v61, 8 }
 0x1dc   :  { %v740_v63 = vpop.xlane.xlu2 %739 }
 0x1dd   :  { %344 = vxpose.xlu1.b32.cont [2/4] (short) (narrow) %v299_v62, 8 }
 0x1df   :  { %v333_v28 = vpop.xlane.xlu1 %332 }
 0x1e2   :  { %787 = vxpose.xlu2.b32.start [1/4] (short) (narrow) %v740_v63, 8 }
 0x1e4   :  { %v133_v5 = vpop.xlane.xlu2 %132 }
 0x1e5   :  { %345 = vxpose.xlu1.b32.cont [3/4] (short) (narrow) %v302_v0, 8 }
 0x1e7   :  { %v777_v34 = vpop.xlane.xlu1 %776 }
 0x1ea   :  { %788 = vxpose.xlu2.b32.cont [2/4] (short) (narrow) %v743_v57, 8 }
 0x1ec   :  { %v124_v12 = vpop.xlane.xlu2 %123 }
 0x1ed   :  { %346 = vxpose.xlu1.b32.end [4/4] (short) (narrow) %v305_v1, 8 }
 0x1ef   :  { %v339_v38 = vpop.xlane.xlu1 %338 }
 0x1f2   :  { %789 = vxpose.xlu2.b32.cont [3/4] (short) (narrow) %v746_v2, 8 }
 0x1f4   :  { %v557_v23 = vpop.xlane.xlu2 %556 }
 0x1f7   :  { %v563_v48 = vpop.xlane.xlu1 %562 }
 0x1fa   :  { %790 = vxpose.xlu2.b32.end [4/4] (short) (narrow) %v749_v3, 8 }
 0x1fc   :  { %v336_v29 = vpop.xlane.xlu2 %335 }
 0x204   :  { %v560_v35 = vpop.xlane.xlu2 %559 }
 0x206   :  { %769 = vrot.lane.b32.xlu0 %v758_v4, %s1436_s0 }
 0x20c   :  { %v780_v41 = vpop.xlane.xlu2 %779 }
 0x224   :  { %v150_v6 = vpop.trf.xlu0 }
 0x225   :  { %v166_v7 = vperm.slane %v150_v6, 0 }
 0x227   :  { %v168_v8 = vadd.f32 %v166_v7, %v127_v49  ;;  %v170_v9 = vadd.f32 %v166_v7, %v133_v5  ;;  %v167_v18 = vadd.f32 %v166_v7, %v124_v12  ;;  %v169_v37 = vadd.f32 %v166_v7, %v130_v58  ;;  %v342_v58 = vpop.xlane.xlu1 %341 }
 0x229   :  { %v172_v10 = vmul.f32 0.2, %v168_v8  ;;  %v174_v14 = vmul.f32 0.2, %v170_v9  ;;  %v171_v21 = vmul.f32 0.2, %v167_v18 }
 0x22a   :  { %v173_v40 = vmul.f32 0.2, %v169_v37 }
 0x22b   :  { %v176_v13 = vmax.f32 %v168_v8, %v172_v10  ;;  %v178_v16 = vmax.f32 %v170_v9, %v174_v14  ;;  %v175_v25 = vmax.f32 %v167_v18, %v171_v21 }
 0x22c   :  { %v177_v43 = vmax.f32 %v169_v37, %v173_v40 }
 0x22d   :  { %v1691_v15 = vadd.f32 %v176_v13, %v1688_v11  ;;  %v1701_v20 = vadd.f32 %v178_v16, %v1698_v19  ;;  %v1711_v27 = vadd.f32 %v175_v25, %v1708_v26 }
 0x22e   :  { %v1724_v45 = vadd.f32 %v177_v43, %v1721_v44 }
 0x22f   :  { %v187_v32 = vsel %vm183_vm2, %v1691_v15, -inf  ;;  %v193_v24 = vsel %vm183_vm2, %v1701_v20, -inf  ;;  %v184_v30 = vsel %vm183_vm2, %v1711_v27, -inf }
 0x230   :  { %188 = vmax.xlane.f32.xlu0 %v187_v32  ;;  %v190_v47 = vsel %vm183_vm2, %v1724_v45, -inf }
 0x238   :  { %194 = vmax.xlane.f32.xlu0 %v193_v24 }
 0x240   :  { %185 = vmax.xlane.f32.xlu0 %v184_v30 }
 0x24d   :  { %782 = vadd.xlane.f32.xlu1 %v781_v36 }
 0x255   :  { %565 = vadd.xlane.f32.xlu1 %v564_v42 }
 0x25b   :  { %v583_v46 = vpop.trf.xlu2 }
 0x25c   :  { %v1726_v17 = vperm.slane %v583_v46, 0 }
 0x25d   :  { %191 = vmax.xlane.f32.xlu1 %v190_v47 }
 0x25e   :  { %v602_v49 = vadd.f32 %v1726_v17, %v563_v48  ;;  %v600_v22 = vadd.f32 %v1726_v17, %v557_v23  ;;  %v601_v32 = vadd.f32 %v1726_v17, %v560_v35 }
 0x260   :  { %v606_v50 = vmul.f32 0.2, %v602_v49  ;;  %v604_v51 = vmul.f32 0.2, %v600_v22  ;;  %v605_v18 = vmul.f32 0.2, %v601_v32 }
 0x262   :  { %v610_v52 = vmax.f32 %v602_v49, %v606_v50  ;;  %v608_v53 = vmax.f32 %v600_v22, %v604_v51  ;;  %v609_v23 = vmax.f32 %v601_v32, %v605_v18 }
 0x264   :  { %v1733_v54 = vadd.f32 %v610_v52, %v1721_v44  ;;  %v1736_v55 = vadd.f32 %v608_v53, %v1708_v26  ;;  %v1763_v25 = vadd.f32 %v609_v23, %v1688_v11 }
 0x266   :  { %v622_v56 = vsel %vm183_vm2, %v1733_v54, -inf  ;;  %v616_v57 = vsel %vm183_vm2, %v1736_v55, -inf }
 0x267   :  { %623 = vmax.xlane.f32.xlu1 %v622_v56  ;;  %617 = vmax.xlane.f32.xlu0 %v616_v57 }
 0x278   :  { %v770_v59 = vpop.permute.xlu0 %769 }
 0x279   :  { %v359_v60 = vpop.trf.xlu1  ;;  %v784_v61 = vsel %vm104_vm1, %v770_v59, 0.0 }
 0x27a   :  { %v375_v62 = vperm.slane %v359_v60, 0  ;;  %785 = vadd.xlane.f32.xlu2 %v784_v61 }
 0x27b   :  { %v803_v1 = vpop.trf.xlu2 }
 0x27c   :  { %v376_v63 = vadd.f32 %v375_v62, %v333_v28  ;;  %v377_v0 = vadd.f32 %v375_v62, %v336_v29  ;;  %v1743_v3 = vperm.slane %v803_v1, 0  ;;  %v378_v24 = vadd.f32 %v375_v62, %v339_v38 }
 0x27d   :  { %v619_v29 = vsel %vm183_vm2, %v1763_v25, -inf  ;;  %v379_v38 = vadd.f32 %v375_v62, %v342_v58 }
 0x27e   :  { %v380_v2 = vmul.f32 0.2, %v376_v63  ;;  %v381_v5 = vmul.f32 0.2, %v377_v0  ;;  %v820_v9 = vadd.f32 %v1743_v3, %v777_v34  ;;  %v382_v28 = vmul.f32 0.2, %v378_v24 }
 0x27f   :  { %v821_v34 = vadd.f32 %v1743_v3, %v780_v41  ;;  %v383_v46 = vmul.f32 0.2, %v379_v38 }
 0x280   :  { %v384_v4 = vmax.f32 %v376_v63, %v380_v2  ;;  %v385_v8 = vmax.f32 %v377_v0, %v381_v5  ;;  %v824_v12 = vmul.f32 0.2, %v820_v9  ;;  %v386_v30 = vmax.f32 %v378_v24, %v382_v28 }
 0x281   :  { %v825_v36 = vmul.f32 0.2, %v821_v34  ;;  %v387_v48 = vmax.f32 %v379_v38, %v383_v46 }
 0x282   :  { %v1746_v6 = vadd.f32 %v384_v4, %v1708_v26  ;;  %v1752_v10 = vadd.f32 %v385_v8, %v1688_v11  ;;  %v828_v14 = vmax.f32 %v820_v9, %v824_v12  ;;  %v1769_v35 = vadd.f32 %v386_v30, %v1721_v44 }
 0x283   :  { %v829_v40 = vmax.f32 %v821_v34, %v825_v36  ;;  %v1780_v50 = vadd.f32 %v387_v48, %v1698_v19 }
 0x284   :  { %v392_v7 = vsel %vm183_vm2, %v1746_v6, -inf  ;;  %v395_v13 = vsel %vm183_vm2, %v1752_v10, -inf  ;;  %v1758_v16 = vadd.f32 %v828_v14, %v1708_v26  ;;  %v398_v37 = vsel %vm183_vm2, %v1769_v35, -inf }
 0x285   :  { %393 = vmax.xlane.f32.xlu0 %v392_v7  ;;  %v1774_v43 = vadd.f32 %v829_v40, %v1688_v11  ;;  %v401_v52 = vsel %vm183_vm2, %v1780_v50, -inf }
 0x286   :  { %v836_v21 = vsel %vm183_vm2, %v1758_v16, -inf }
 0x287   :  { %v839_v41 = vsel %vm183_vm2, %v1774_v43, -inf }
 0x28d   :  { %396 = vmax.xlane.f32.xlu0 %v395_v13 }
 0x295   :  { %837 = vmax.xlane.f32.xlu0 %v836_v21 }
 0x29d   :  { %620 = vmax.xlane.f32.xlu0 %v619_v29 }
 0x2a3   :  { %v189_v42 = vpop.xlane.xlu0 %188 }
 0x2a4   :  { %v197_v47 = vsub.f32 %v1691_v15, %v189_v42 }
 0x2a5   :  { %399 = vmax.xlane.f32.xlu0 %v398_v37 }
 0x2a6   :  { %v202_v49 = vmul.f32 1.442695, %v197_v47 }
 0x2a8   :  { %1353 = vpow2.f32 %v202_v49 }
 0x2ab   :  { %v195_v22 = vpop.xlane.xlu0 %194 }
 0x2ac   :  { %v199_v51 = vsub.f32 %v1701_v20, %v195_v22 }
 0x2ad   :  { %840 = vmax.xlane.f32.xlu0 %v839_v41 }
 0x2ae   :  { %v206_v53 = vmul.f32 1.442695, %v199_v51  ;;  %v1785_v56 = vpop.eup %1353 }
 0x2af   :  { %v211_v15 = vsel %vm183_vm2, %v1785_v56, 0.0 }
 0x2b0   :  { %1355 = vpow2.f32 %v206_v53 }
 0x2b3   :  { %v186_v12 = vpop.xlane.xlu0 %185 }
 0x2b5   :  { %402 = vmax.xlane.f32.xlu0 %v401_v52 }
 0x2b6   :  { %v1789_v58 = vpop.eup %1355 }
 0x2b7   :  { %v217_v20 = vsel %vm183_vm2, %v1789_v58, 0.0 }
 0x2bd   :  { %212 = vadd.xlane.f32.xlu0 %v211_v15 }
 0x2c0   :  { %v783_v57 = vpop.xlane.xlu1 %782 }
 0x2c1   :  { %v822_v59 = vadd.f32 %v1743_v3, %v783_v57 }
 0x2c3   :  { %v826_v60 = vmul.f32 0.2, %v822_v59 }
 0x2c5   :  { %v830_v61 = vmax.f32 %v822_v59, %v826_v60  ;;  %218 = vadd.xlane.f32.xlu0 %v217_v20 }
 0x2c7   :  { %v1795_v62 = vadd.f32 %v830_v61, %v1721_v44 }
 0x2c8   :  { %v566_v63 = vpop.xlane.xlu1 %565 }
 0x2c9   :  { %v603_v0 = vadd.f32 %v1726_v17, %v566_v63  ;;  %v842_v1 = vsel %vm183_vm2, %v1795_v62, -inf  ;;  %v1317_v17 = vpack.i.bf16 %v1579_v33, %v1595_v39  ;;  %v196_v39 = vsub.f32 %v1711_v27, %v186_v12 }
 0x2ca   :  { %843 = vmax.xlane.f32.xlu2 %v842_v1 }
 0x2cb   :  { %v607_v2 = vmul.f32 0.2, %v603_v0  ;;  %v200_v29 = vmul.f32 1.442695, %v196_v39 }
 0x2cd   :  { %v611_v4 = vmax.f32 %v603_v0, %v607_v2 }
 0x2cf   :  { %v1801_v5 = vadd.f32 %v611_v4, %v1698_v19 }
 0x2d0   :  { %v192_v7 = vpop.xlane.xlu1 %191 }
 0x2d1   :  { %v198_v8 = vsub.f32 %v1724_v45, %v192_v7  ;;  %v625_v9 = vsel %vm183_vm2, %v1801_v5, -inf }
 0x2d2   :  { %626 = vmax.xlane.f32.xlu1 %v625_v9 }
 0x2d3   :  { %v204_v13 = vmul.f32 1.442695, %v198_v8 }
 0x2d5   :  { %1357 = vpow2.f32 %v204_v13 }
 0x2d9   :  { %1318 = vrot.lane.b32.xlu0 %v1317_v17, %s1437_s24 }
 0x2da   :  { %v618_v14 = vpop.xlane.xlu0 %617 }
 0x2db   :  { %v1809_v32 = vpop.eup %1357  ;;  %v628_v18 = vsub.f32 %v1736_v55, %v618_v14 }
 0x2dc   :  { %v214_v45 = vsel %vm183_vm2, %v1809_v32, 0.0 }
 0x2dd   :  { %v632_v21 = vmul.f32 1.442695, %v628_v18  ;;  %215 = vadd.xlane.f32.xlu1 %v214_v45 }
 0x2df   :  { %1359 = vpow2.f32 %v632_v21 }
 0x2e0   :  { %1361 = vpow2.f32 %v200_v29 }
 0x2e1   :  { %1328 = vrot.lane.b32.xlu0 %v1317_v17, %s1438_s25 }
 0x2e5   :  { %v1815_v23 = vpop.eup %1359 }
 0x2e6   :  { %v640_v33 = vsel %vm183_vm2, %v1815_v23, 0.0  ;;  %v1827_v40 = vpop.eup %1361 }
 0x2e7   :  { %641 = vadd.xlane.f32.xlu1 %v640_v33  ;;  %v208_v27 = vsel %vm183_vm2, %v1827_v40, 0.0 }
 0x2e9   :  { %1333 = vrot.lane.b32.xlu0 %v1317_v17, %s1436_s0 }
 0x2ed   :  { %v786_v24 = vpop.xlane.xlu2 %785 }
 0x2ee   :  { %v823_v55 = vadd.f32 %v1743_v3, %v786_v24 }
 0x2f0   :  { %v827_v28 = vmul.f32 0.2, %v823_v55 }
 0x2f2   :  { %v831_v30 = vmax.f32 %v823_v55, %v827_v28 }
 0x2f4   :  { %v1823_v34 = vadd.f32 %v831_v30, %v1698_v19 }
 0x2f6   :  { %v845_v36 = vsel %vm183_vm2, %v1823_v34, -inf }
 0x2f7   :  { %846 = vmax.xlane.f32.xlu2 %v845_v36 }
 0x2f8   :  { %v394_v37 = vpop.xlane.xlu0 %393 }
 0x2f9   :  { %v404_v1 = vsub.f32 %v1746_v6, %v394_v37  ;;  %v624_v6 = vpop.xlane.xlu1 %623 }
 0x2fa   :  { %v630_v39 = vsub.f32 %v1733_v54, %v624_v6 }
 0x2fb   :  { %v408_v4 = vmul.f32 1.442695, %v404_v1 }
 0x2fc   :  { %v636_v29 = vmul.f32 1.442695, %v630_v39 }
 0x2ff   :  { %209 = vadd.xlane.f32.xlu2 %v208_v27 }
 0x300   :  { %v397_v38 = vpop.xlane.xlu0 %396 }
 0x301   :  { %v405_v3 = vsub.f32 %v1752_v10, %v397_v38 }
 0x303   :  { %v410_v42 = vmul.f32 1.442695, %v405_v3 }
 0x305   :  { %1363 = vpow2.f32 %v410_v42 }
 0x308   :  { %v838_v46 = vpop.xlane.xlu0 %837 }
 0x309   :  { %v848_v47 = vsub.f32 %v1758_v16, %v838_v46 }
 0x30b   :  { %v1833_v41 = vpop.eup %1363  ;;  %v852_v48 = vmul.f32 1.442695, %v848_v47 }
 0x30c   :  { %v419_v49 = vsel %vm183_vm2, %v1833_v41, 0.0 }
 0x30d   :  { %1365 = vpow2.f32 %v852_v48  ;;  %420 = vadd.xlane.f32.xlu1 %v419_v49 }
 0x310   :  { %v621_v22 = vpop.xlane.xlu0 %620 }
 0x311   :  { %v629_v51 = vsub.f32 %v1763_v25, %v621_v22 }
 0x313   :  { %v1838_v52 = vpop.eup %1365  ;;  %v634_v53 = vmul.f32 1.442695, %v629_v51 }
 0x314   :  { %v860_v10 = vsel %vm183_vm2, %v1838_v52, 0.0 }
 0x315   :  { %1367 = vpow2.f32 %v634_v53  ;;  %861 = vadd.xlane.f32.xlu1 %v860_v10 }
 0x317   :  { %1323 = vrot.lane.b32.xlu2 %v1574_v31, %s1437_s24 }
 0x318   :  { %v400_v16 = vpop.xlane.xlu0 %399 }
 0x319   :  { %v406_v15 = vsub.f32 %v1769_v35, %v400_v16 }
 0x31b   :  { %v1845_v57 = vpop.eup %1367  ;;  %v412_v59 = vmul.f32 1.442695, %v406_v15 }
 0x31c   :  { %v643_v25 = vsel %vm183_vm2, %v1845_v57, 0.0 }
 0x31d   :  { %1369 = vpow2.f32 %v412_v59  ;;  %644 = vadd.xlane.f32.xlu1 %v643_v25 }
 0x320   :  { %v1849_v60 = vpop.xlane.xlu0 %840 }
 0x321   :  { %v849_v49 = vsub.f32 %v1774_v43, %v1849_v60 }
 0x323   :  { %v1851_v20 = vpop.eup %1369  ;;  %v854_v53 = vmul.f32 1.442695, %v849_v49 }
 0x324   :  { %v422_v61 = vsel %vm183_vm2, %v1851_v20, 0.0 }
 0x325   :  { %423 = vadd.xlane.f32.xlu0 %v422_v61 }
 0x328   :  { %v403_v63 = vpop.xlane.xlu0 %402 }
 0x329   :  { %v407_v0 = vsub.f32 %v1780_v50, %v403_v63 }
 0x32b   :  { %v414_v35 = vmul.f32 1.442695, %v407_v0 }
 0x32d   :  { %1371 = vpow2.f32 %v414_v35 }
 0x330   :  { %v213_v2 = vpop.xlane.xlu0 %212 }
 0x331   :  { %1373 = vrcp.f32 %v213_v2 }
 0x332   :  { %1375 = vpow2.f32 %v408_v4 }
 0x333   :  { %v1857_v7 = vpop.eup %1371 }
 0x334   :  { %v425_v8 = vsel %vm183_vm2, %v1857_v7, 0.0 }
 0x335   :  { %426 = vadd.xlane.f32.xlu0 %v425_v8 }
 0x336   :  { %1338 = vrot.lane.b32.xlu1 %v1574_v31, %s1438_s25 }
 0x337   :  { %v1374_v9 = vpop.eup %1373 }
 0x338   :  { %v225_v50 = vmul.f32 %v1374_v9, %v1785_v56  ;;  %v1865_v12 = vpop.eup %1375  ;;  %v219_v17 = vpop.xlane.xlu0 %218 }
 0x339   :  { %v416_v13 = vsel %vm183_vm2, %v1865_v12, 0.0 }
 0x33a   :  { %1279 = vmatmul.msk.f32.vlgmr.msra.gmra.mxu3 %vm183_vm2, %v225_v50 }
 0x340   :  { %417 = vadd.xlane.f32.xlu2 %v416_v13 }
 0x345   :  { %v627_v14 = vpop.xlane.xlu1 %626 }
 0x346   :  { %v631_v18 = vsub.f32 %v1801_v5, %v627_v14 }
 0x348   :  { %v638_v45 = vmul.f32 1.442695, %v631_v18 }
 0x34a   :  { %1377 = vpow2.f32 %v638_v45 }
 0x34b   :  { %v1319_v21 = vpop.permute.xlu0 %1318 }
 0x34c   :  { %v1320_v33 = vunpack.i.l.bf16 %v1319_v21  ;;  %v1321_v56 = vunpack.i.h.bf16 %v1319_v21 }
 0x34e   :  { %696 = vmatpush.msrb.mxu3 %v1320_v33 }
 0x350   :  { %v1871_v24 = vpop.eup %1377  ;;  %v216_v55 = vpop.xlane.xlu1 %215  ;;  %697 = vmatpush.msrb.mxu3 %v1321_v56 }
 0x351   :  { %1379 = vrcp.f32 %v216_v55  ;;  %v649_v28 = vsel %vm183_vm2, %v1871_v24, 0.0 }
 0x352   :  { %650 = vadd.xlane.f32.xlu0 %v649_v28  ;;  %1381 = vpow2.f32 %v636_v29 }
 0x353   :  { %v1329_v30 = vpop.permute.xlu0 %1328  ;;  %1383 = vrcp.f32 %v219_v17 }
 0x354   :  { %v1330_v5 = vunpack.i.l.bf16 %v1329_v30  ;;  %v1331_v36 = vunpack.i.h.bf16 %v1329_v30 }
 0x356   :  { %476 = vmatpush.msrb.mxu1 %v1330_v5  ;;  %1306 = vmatpush.msra.mxu2 %v1330_v5 }
 0x357   :  { %v1380_v37 = vpop.eup %1379 }
 0x358   :  { %477 = vmatpush.msrb.mxu1 %v1331_v36  ;;  %1307 = vmatpush.msra.mxu2 %v1331_v36  ;;  %v226_v54 = vmul.f32 %v1380_v37, %v1809_v32  ;;  %v1879_v38 = vpop.eup %1381  ;;  %v844_v32 = vpop.xlane.xlu2 %843 }
 0x359   :  { %1343 = vrot.lane.b32.xlu2 %v1574_v31, %s1436_s0  ;;  %v1384_v42 = vpop.eup %1383  ;;  %v646_v47 = vsel %vm183_vm2, %v1879_v38, 0.0  ;;  %v850_v10 = vsub.f32 %v1795_v62, %v844_v32 }
 0x35a   :  { %1280 = vmatmul.msk.f32.gmra.mxu3 %vm183_vm2, %v226_v54  ;;  %v227_v48 = vmul.f32 %v1384_v42, %v1789_v58  ;;  %v642_v22 = vpop.xlane.xlu1 %641 }
 0x35b   :  { %v1334_v27 = vpop.permute.xlu0 %1333  ;;  %v856_v61 = vmul.f32 1.442695, %v850_v10 }
 0x35c   :  { %v1335_v3 = vunpack.i.l.bf16 %v1334_v27  ;;  %v1336_v46 = vunpack.i.h.bf16 %v1334_v27 }
 0x35e   :  { %916 = vmatpush.msrb.mxu0 %v1335_v3 }
 0x360   :  { %647 = vadd.xlane.f32.xlu1 %v646_v47  ;;  %917 = vmatpush.msrb.mxu0 %v1336_v46 }
 0x362   :  { %1281 = vmatmul.msk.f32.gmra.mxu3 %vm183_vm2, %v227_v48 }
 0x36a   :  { %v847_v31 = vpop.xlane.xlu2 %846 }
 0x36b   :  { %v851_v0 = vsub.f32 %v1823_v34, %v847_v31 }
 0x36d   :  { %v858_v35 = vmul.f32 1.442695, %v851_v0 }
 0x372   :  { %v210_v51 = vpop.xlane.xlu2 %209 }
 0x373   :  { %1385 = vrcp.f32 %v210_v51 }
 0x374   :  { %1387 = vrcp.f32 %v642_v22 }
 0x375   :  { %1389 = vpow2.f32 %v854_v53 }
 0x376   :  { %1391 = vpow2.f32 %v856_v61 }
 0x377   :  { %1393 = vpow2.f32 %v858_v35  ;;  %v1008_v35 = vld [vmem:[%s2056_s6 + $0x10] sm:$0xff] }
 0x379   :  { %v1386_v16 = vpop.eup %1385 }
 0x37a   :  { %v1324_v15 = vpop.permute.xlu2 %1323  ;;  %v224_v59 = vmul.f32 %v1386_v16, %v1827_v40  ;;  %v1388_v58 = vpop.eup %1387 }
 0x37b   :  { %v1325_v25 = vunpack.i.l.bf16 %v1324_v15  ;;  %v1326_v63 = vunpack.i.h.bf16 %v1324_v15  ;;  %v1890_v43 = vpop.eup %1389  ;;  %v656_v60 = vmul.f32 %v1388_v58, %v1815_v23 }
 0x37c   :  { %1278 = vmatmul.msk.f32.vlgmr.msra.gmra.mxu1 %vm183_vm2, %v224_v59  ;;  %v863_v40 = vsel %vm183_vm2, %v1890_v43, 0.0  ;;  %v1897_v1 = vpop.eup %1391 }
 0x37d   :  { %698 = vmatpush.msrb.mxu3 %v1325_v25  ;;  %v866_v4 = vsel %vm183_vm2, %v1897_v1, 0.0  ;;  %v1901_v23 = vpop.eup %1393 }
 0x37e   :  { %v869_v34 = vsel %vm183_vm2, %v1901_v23, 0.0 }
 0x37f   :  { %699 = vmatpush.msrb.mxu3 %v1326_v63 }
 0x380   :  { %v421_v62 = vpop.xlane.xlu1 %420  ;;  %1286 = vmatmul.msk.f32.vlgmr.msrb.gmra.mxu3 %vm183_vm2, %v656_v60 }
 0x382   :  { %864 = vadd.xlane.f32.xlu2 %v863_v40  ;;  %v1009_v40 = vld [vmem:[%s2056_s6 + $0x18] sm:$0xff] }
 0x388   :  { %v862_v2 = vpop.xlane.xlu1 %861 }
 0x38a   :  { %867 = vadd.xlane.f32.xlu2 %v866_v4  ;;  %v1347_v4 = vld [vmem:[%s2055_s5] ss:$0 sm:$0xff] }
 0x390   :  { %v645_v8 = vpop.xlane.xlu1 %644 }
 0x391   :  { %1395 = vrcp.f32 %v645_v8 }
 0x392   :  { %870 = vadd.xlane.f32.xlu2 %v869_v34  ;;  %1397 = vrcp.f32 %v421_v62 }
 0x397   :  { %v1396_v9 = vpop.eup %1395 }
 0x398   :  { %v657_v50 = vmul.f32 %v1396_v9, %v1845_v57  ;;  %v424_v6 = vpop.xlane.xlu0 %423  ;;  %v1398_v17 = vpop.eup %1397 }
 0x399   :  { %1399 = vrcp.f32 %v424_v6  ;;  %v433_v45 = vmul.f32 %v1398_v17, %v1833_v41 }
 0x39a   :  { %1287 = vmatmul.msk.f32.gmra.mxu3 %vm183_vm2, %v657_v50 }
 0x39f   :  { %v1400_v33 = vpop.eup %1399 }
 0x3a0   :  { %v434_v39 = vmul.f32 %v1400_v33, %v1851_v20 }
 0x3a8   :  { %v1339_v13 = vpop.permute.xlu1 %1338  ;;  %v427_v21 = vpop.xlane.xlu0 %426 }
 0x3a9   :  { %v1340_v14 = vunpack.i.l.bf16 %v1339_v13  ;;  %v1341_v18 = vunpack.i.h.bf16 %v1339_v13  ;;  %1401 = vrcp.f32 %v427_v21 }
 0x3ab   :  { %478 = vmatpush.msrb.mxu1 %v1340_v14  ;;  %1308 = vmatpush.msra.mxu2 %v1340_v14 }
 0x3ad   :  { %479 = vmatpush.msrb.mxu1 %v1341_v18  ;;  %1309 = vmatpush.msra.mxu2 %v1341_v18 }
 0x3ae   :  { %1283 = vmatmul.msk.f32.vlgmr.msra.gmra.mxu2 %vm183_vm2, %v433_v45 }
 0x3af   :  { %v1402_v56 = vpop.eup %1401  ;;  %1034 = vmatpush.msra.mxu1 %v1009_v40 }
 0x3b0   :  { %v435_v30 = vmul.f32 %v1402_v56, %v1857_v7 }
 0x3b1   :  { %1035 = vmatpush.msra.mxu1 %v1008_v35 }
 0x3b3   :  { %v418_v57 = vpop.xlane.xlu2 %417 }
 0x3b4   :  { %1403 = vrcp.f32 %v418_v57 }
 0x3b5   :  { %1405 = vrcp.f32 %v862_v2  ;;  %v1006_v2 = vld [vmem:[%s2056_s6] sm:$0xff] }
 0x3b6   :  { %1284 = vmatmul.msk.f32.gmra.mxu2 %vm183_vm2, %v434_v39 }
 0x3ba   :  { %v1404_v55 = vpop.eup %1403 }
 0x3bb   :  { %v1344_v28 = vpop.permute.xlu2 %1343  ;;  %v432_v29 = vmul.f32 %v1404_v55, %v1865_v12  ;;  %v1406_v41 = vpop.eup %1405 }
 0x3bc   :  { %v1345_v5 = vunpack.i.l.bf16 %v1344_v28  ;;  %v1346_v36 = vunpack.i.h.bf16 %v1344_v28  ;;  %v876_v20 = vmul.f32 %v1406_v41, %v1838_v52 }
 0x3bd   :  { %1282 = vmatmul.msk.f32.vlgmr.msrb.gmra.mxu1 %vm183_vm2, %v432_v29  ;;  %v1921_v42 = vpop.f32.mrf.mxu3 }
 0x3be   :  { %1285 = vmatmul.msk.f32.gmra.mxu2 %vm183_vm2, %v435_v30  ;;  %918 = vmatpush.msrb.mxu0 %v1345_v5 }
 0x3c0   :  { %919 = vmatpush.msrb.mxu0 %v1346_v36 }
 0x3c1   :  { %1290 = vmatmul.msk.f32.vlgmr.msrb.gmra.mxu0 %vm183_vm2, %v876_v20 }
 0x3c5   :  { %v651_v54 = vpop.xlane.xlu0 %650 }
 0x3d3   :  { %v648_v37 = vpop.xlane.xlu1 %647 }
 0x3d4   :  { %1407 = vrcp.f32 %v648_v37 }
 0x3d5   :  { %1409 = vrcp.f32 %v651_v54 }
 0x3da   :  { %v1408_v27 = vpop.eup %1407 }
 0x3db   :  { %v658_v12 = vmul.f32 %v1408_v27, %v1879_v38  ;;  %v1410_v7 = vpop.eup %1409 }
 0x3dc   :  { %v659_v3 = vmul.f32 %v1410_v7, %v1871_v24 }
 0x3dd   :  { %1288 = vmatmul.msk.f32.gmra.mxu3 %vm183_vm2, %v658_v12  ;;  %v1923_v52 = vpop.f32.mrf.mxu3 }
 0x3e5   :  { %1289 = vmatmul.msk.f32.gmra.mxu3 %vm183_vm2, %v659_v3  ;;  %v1925_v47 = vpop.f32.mrf.mxu3 }
 0x3f5   :  { %v865_v46 = vpop.xlane.xlu2 %864 }
 0x3f6   :  { %1411 = vrcp.f32 %v865_v46  ;;  %v1348_v46 = vld [vmem:[%s2057_s7] ss:$0 sm:$0xff] }
 0x3f9   :  { %v257_v16 = vpop.f32.mrf.mxu1 }
 0x3fc   :  { %v1412_v48 = vpop.eup %1411 }
 0x3fd   :  { %v868_v32 = vpop.xlane.xlu2 %867  ;;  %v877_v31 = vmul.f32 %v1412_v48, %v1890_v43 }
 0x3fe   :  { %1413 = vrcp.f32 %v868_v32 }
 0x3ff   :  { %1291 = vmatmul.msk.f32.gmra.mxu0 %vm183_vm2, %v877_v31 }
 0x403   :  { %v701_v38 = vpop.f32.mrf.mxu3 }
 0x404   :  { %v1414_v49 = vpop.eup %1413  ;;  %953 = vrot.lane.b32.xlu1 %v701_v38, %s1434_s18 }
 0x405   :  { %v871_v24 = vpop.xlane.xlu2 %870  ;;  %v878_v22 = vmul.f32 %v1414_v49, %v1897_v1  ;;  %v1007_v1 = vld [vmem:[%s2056_s6 + $0x8] sm:$0xff] }
 0x406   :  { %1415 = vrcp.f32 %v871_v24  ;;  %1036 = vmatpush.msra.mxu1 %v1007_v1  ;;  %v1349_v24 = vld [vmem:[%s2058_s8] ss:$0 sm:$0xff] }
 0x407   :  { %1292 = vmatmul.msk.f32.gmra.mxu0 %vm183_vm2, %v878_v22 }
 0x408   :  { %1037 = vmatpush.msra.mxu1 %v1006_v2 }
 0x40c   :  { %v1416_v51 = vpop.eup %1415 }
 0x40d   :  { %v879_v53 = vmul.f32 %v1416_v51, %v1901_v23 }
 0x40f   :  { %1293 = vmatmul.msk.f32.gmra.mxu0 %vm183_vm2, %v879_v53 }
 0x41d   :  { %v704_v10 = vpop.f32.mrf.mxu3 }
 0x41e   :  { %955 = vrot.lane.b32.xlu1 %v704_v10, %s1434_s18 }
 0x431   :  { %v484_v59 = vpop.f32.mrf.mxu2 }
 0x439   :  { %v487_v25 = vpop.f32.mrf.mxu2 }
 0x43a   :  { %v481_v15 = vpop.f32.mrf.mxu1 }
 0x43b   :  { %937 = vrot.lane.b32.xlu0 %v481_v15, %s1435_s19 }
 0x43e   :  { %v921_v58 = vpop.f32.mrf.mxu0 }
 0x43f   :  { %969 = vrot.lane.b32.xlu2 %v921_v58, %s1433_s2 }
 0x441   :  { %v490_v61 = vpop.f32.mrf.mxu2 }
 0x443   :  { %939 = vrot.lane.b32.xlu0 %v484_v59, %s1435_s19 }
 0x44b   :  { %941 = vrot.lane.b32.xlu0 %v487_v25, %s1435_s19 }
 0x453   :  { %943 = vrot.lane.b32.xlu0 %v490_v61, %s1435_s19 }
 0x460   :  { %v707_v63 = vpop.f32.mrf.mxu3 }
 0x461   :  { %957 = vrot.lane.b32.xlu1 %v707_v63, %s1434_s18 }
 0x468   :  { %v710_v43 = vpop.f32.mrf.mxu3 }
 0x469   :  { %959 = vrot.lane.b32.xlu1 %v710_v43, %s1434_s18 }
 0x476   :  { %v954_v8 = vpop.permute.xlu1 %953 }
 0x47c   :  { %v924_v60 = vpop.f32.mrf.mxu0 }
 0x47d   :  { %971 = vrot.lane.b32.xlu2 %v924_v60, %s1433_s2 }
 0x484   :  { %v927_v0 = vpop.f32.mrf.mxu0 }
 0x485   :  { %973 = vrot.lane.b32.xlu2 %v927_v0, %s1433_s2 }
 0x48c   :  { %v930_v62 = vpop.f32.mrf.mxu0 }
 0x48d   :  { %975 = vrot.lane.b32.xlu2 %v930_v62, %s1433_s2 }
 0x490   :  { %v956_v18 = vpop.permute.xlu1 %955 }
 0x499   :  { %v970_v9 = vpop.permute.xlu2 %969 }
 0x4ad   :  { %v938_v23 = vpop.permute.xlu0 %937 }
 0x4ae   :  { %v981_v34 = vsel %vm104_vm1, %v257_v16, %v938_v23 }
 0x4af   :  { %v985_v50 = vsel %vm55_vm0, %v981_v34, %v954_v8 }
 0x4b0   :  { %v990_v6 = vsel %vm989_vm3, %v985_v50, %v970_v9 }
 0x4b1   :  { %v998_v13 = vadd.f32 %v1347_v4, %v990_v6 }
 0x4b3   :  { %v1002_v17 = vmax.f32 %v998_v13, 0.0 }
 0x4b5   :  { %1294 = vmatmul.msk.f32.vlgmr.msra.gmra.mxu1 %vm183_vm2, %v1002_v17  ;;  %v940_v14 = vpop.permute.xlu0 %939 }
 0x4b6   :  { %v982_v45 = vsel %vm104_vm1, %v1921_v42, %v940_v14 }
 0x4b7   :  { %v986_v33 = vsel %vm55_vm0, %v982_v45, %v956_v18 }
 0x4bd   :  { %v942_v39 = vpop.permute.xlu0 %941 }
 0x4be   :  { %v983_v29 = vsel %vm104_vm1, %v1923_v52, %v942_v39 }
 0x4c5   :  { %v944_v20 = vpop.permute.xlu0 %943 }
 0x4c6   :  { %v984_v27 = vsel %vm104_vm1, %v1925_v47, %v944_v20 }
 0x4d3   :  { %v958_v55 = vpop.permute.xlu1 %957 }
 0x4d4   :  { %v987_v41 = vsel %vm55_vm0, %v983_v29, %v958_v55 }
 0x4d7   :  { %v972_v21 = vpop.permute.xlu2 %971 }
 0x4d8   :  { %v991_v57 = vsel %vm989_vm3, %v986_v33, %v972_v21 }
 0x4d9   :  { %v999_v56 = vadd.f32 %v1347_v4, %v991_v57 }
 0x4db   :  { %v1003_v28 = vmax.f32 %v999_v56, 0.0  ;;  %v960_v54 = vpop.permute.xlu1 %959 }
 0x4dc   :  { %v988_v12 = vsel %vm55_vm0, %v984_v27, %v960_v54 }
 0x4dd   :  { %1295 = vmatmul.msk.f32.gmra.mxu1 %vm183_vm2, %v1003_v28 }
 0x4df   :  { %v974_v30 = vpop.permute.xlu2 %973 }
 0x4e0   :  { %v992_v5 = vsel %vm989_vm3, %v987_v41, %v974_v30 }
 0x4e1   :  { %v1000_v36 = vadd.f32 %v1347_v4, %v992_v5 }
 0x4e3   :  { %v1004_v37 = vmax.f32 %v1000_v36, 0.0 }
 0x4e5   :  { %1296 = vmatmul.msk.f32.gmra.mxu1 %vm183_vm2, %v1004_v37 }
 0x4e7   :  { %v976_v7 = vpop.permute.xlu2 %975 }
 0x4e8   :  { %v993_v3 = vsel %vm989_vm3, %v988_v12, %v976_v7 }
 0x4e9   :  { %v1001_v42 = vadd.f32 %v1347_v4, %v993_v3 }
 0x4eb   :  { %v1005_v52 = vmax.f32 %v1001_v42, 0.0 }
 0x4ed   :  { %1297 = vmatmul.msk.f32.gmra.mxu1 %vm183_vm2, %v1005_v52 }
 0x532   :  { %v1039_v48 = vpop.f32.mrf.mxu1 }
 0x533   :  { %v1056_v32 = vmul.f32 %v1348_v46, %v1039_v48  ;;  %v1075_v15 = vmul.f32 %v1349_v24, %v1039_v48 }
 0x535   :  { %v1060_v31 = vsel %vm104_vm1, %v1056_v32, 0.0  ;;  %v1079_v61 = vsel %vm104_vm1, %v1075_v15, 0.0 }
 0x536   :  { %1061 = vadd.xlane.f32.xlu0 %v1060_v31 }
 0x55a   :  { %v1042_v38 = vpop.f32.mrf.mxu1 }
 0x55b   :  { %v1057_v47 = vmul.f32 %v1348_v46, %v1042_v38  ;;  %v1076_v22 = vmul.f32 %v1349_v24, %v1042_v38 }
 0x55d   :  { %v1063_v49 = vsel %vm104_vm1, %v1057_v47, 0.0  ;;  %v1082_v16 = vsel %vm104_vm1, %v1076_v22, 0.0 }
 0x55e   :  { %1064 = vadd.xlane.f32.xlu1 %v1063_v49 }
 0x562   :  { %v1045_v51 = vpop.f32.mrf.mxu1 }
 0x563   :  { %v1058_v53 = vmul.f32 %v1348_v46, %v1045_v51  ;;  %v1077_v60 = vmul.f32 %v1349_v24, %v1045_v51 }
 0x565   :  { %v1066_v10 = vsel %vm104_vm1, %v1058_v53, 0.0  ;;  %v1085_v0 = vsel %vm104_vm1, %v1077_v60, 0.0  ;;  %v1350_v60 = vld [vmem:[%s2059_s9] ss:$0 sm:$0xff] }
 0x566   :  { %1067 = vadd.xlane.f32.xlu2 %v1066_v10  ;;  %1083 = vadd.xlane.f32.xlu1 %v1082_v16 }
 0x56a   :  { %v1048_v59 = vpop.f32.mrf.mxu1 }
 0x56b   :  { %v1059_v58 = vmul.f32 %v1348_v46, %v1048_v59  ;;  %v1078_v25 = vmul.f32 %v1349_v24, %v1048_v59  ;;  %1212 = vmatpush.msrb.mxu2 %v1048_v59 }
 0x56d   :  { %1213 = vmatpush.msrb.mxu2 %v1045_v51  ;;  %v1088_v63 = vsel %vm104_vm1, %v1078_v25, 0.0  ;;  %v1069_v43 = vsel %vm104_vm1, %v1059_v58, 0.0 }
 0x56e   :  { %1080 = vadd.xlane.f32.xlu2 %v1079_v61  ;;  %1089 = vadd.xlane.f32.xlu1 %v1088_v63 }
 0x56f   :  { %1070 = vadd.xlane.f32.xlu0 %v1069_v43  ;;  %1214 = vmatpush.msrb.mxu2 %v1042_v38 }
 0x571   :  { %1215 = vmatpush.msrb.mxu2 %v1039_v48 }
 0x577   :  { %1086 = vadd.xlane.f32.xlu0 %v1085_v0  ;;  %v19_v0 = vstv %s2061_s11 }
 0x578   :  { %20 = vst [vmem:[#allocation2] sm:$0x1] %v19_v0 }
 0x5a9   :  { %v1062_v62 = vpop.xlane.xlu0 %1061 }
 0x5aa   :  { %1091 = vxpose.xlu2.b32.start [1/4] (short) (narrow) %v1062_v62, 8  ;;  %v1351_v62 = vld [vmem:[%s2060_s10] ss:$0 sm:$0xff] }
 0x5d1   :  { %v1065_v40 = vpop.xlane.xlu1 %1064 }
 0x5d2   :  { %1092 = vxpose.xlu2.b32.cont [2/4] (short) (narrow) %v1065_v40, 8 }
 0x5d9   :  { %v1068_v35 = vpop.xlane.xlu2 %1067  ;;  %v1084_v2 = vpop.xlane.xlu1 %1083 }
 0x5da   :  { %1093 = vxpose.xlu2.b32.cont [3/4] (short) (narrow) %v1068_v35, 8 }
 0x5e1   :  { %v1081_v4 = vpop.xlane.xlu2 %1080  ;;  %v1090_v34 = vpop.xlane.xlu1 %1089 }
 0x5e2   :  { %v1071_v1 = vpop.xlane.xlu0 %1070 }
 0x5e3   :  { %1094 = vxpose.xlu2.b32.end [4/4] (short) (narrow) %v1071_v1, 8 }
 0x5ea   :  { %v1087_v9 = vpop.xlane.xlu0 %1086 }
 0x664   :  { %v1107_v23 = vpop.trf.xlu2 }
 0x665   :  { %v1123_v8 = vperm.slane %v1107_v23, 0 }
 0x667   :  { %v1124_v50 = vadd.f32 %v1123_v8, %v1081_v4  ;;  %v1125_v6 = vadd.f32 %v1123_v8, %v1084_v2  ;;  %v1126_v13 = vadd.f32 %v1123_v8, %v1087_v9  ;;  %v1127_v17 = vadd.f32 %v1123_v8, %v1090_v34 }
 0x669   :  { %v1128_v14 = vmul.f32 0.2, %v1124_v50  ;;  %v1129_v18 = vmul.f32 0.2, %v1125_v6  ;;  %v1130_v33 = vmul.f32 0.2, %v1126_v13 }
 0x66a   :  { %v1131_v57 = vmul.f32 0.2, %v1127_v17 }
 0x66b   :  { %v1132_v45 = vmax.f32 %v1124_v50, %v1128_v14  ;;  %v1133_v21 = vmax.f32 %v1125_v6, %v1129_v18  ;;  %v1134_v29 = vmax.f32 %v1126_v13, %v1130_v33 }
 0x66c   :  { %v1135_v41 = vmax.f32 %v1127_v17, %v1131_v57 }
 0x66d   :  { %v1136_v39 = vadd.f32 %v1132_v45, %v1708_v26  ;;  %v1137_v56 = vadd.f32 %v1133_v21, %v1688_v11  ;;  %v1138_v30 = vadd.f32 %v1134_v29, %v1721_v44  ;;  %v1352_v21 = vld [vmem:[#allocation2] ss:$0 sm:$0xff] }
 0x66e   :  { %v1139_v5 = vadd.f32 %v1135_v41, %v1698_v19 }
 0x66f   :  { %v1140_v55 = vsel %vm183_vm2, %v1136_v39, -inf  ;;  %v1143_v28 = vsel %vm183_vm2, %v1137_v56, -inf  ;;  %v1146_v36 = vsel %vm183_vm2, %v1138_v30, -inf }
 0x670   :  { %1141 = vmax.xlane.f32.xlu0 %v1140_v55  ;;  %1144 = vmax.xlane.f32.xlu1 %v1143_v28  ;;  %v1149_v20 = vsel %vm183_vm2, %v1139_v5, -inf }
 0x678   :  { %1147 = vmax.xlane.f32.xlu0 %v1146_v36  ;;  %1150 = vmax.xlane.f32.xlu1 %v1149_v20 }
 0x6e3   :  { %v1142_v26 = vpop.xlane.xlu0 %1141  ;;  %v1145_v11 = vpop.xlane.xlu1 %1144 }
 0x6e4   :  { %v1152_v37 = vsub.f32 %v1136_v39, %v1142_v26  ;;  %v1153_v54 = vsub.f32 %v1137_v56, %v1145_v11 }
 0x6e6   :  { %v1156_v27 = vmul.f32 1.442695, %v1152_v37  ;;  %v1158_v12 = vmul.f32 1.442695, %v1153_v54 }
 0x6e8   :  { %1417 = vpow2.f32 %v1156_v27 }
 0x6e9   :  { %1419 = vpow2.f32 %v1158_v12 }
 0x6eb   :  { %v1148_v7 = vpop.xlane.xlu0 %1147  ;;  %v1151_v3 = vpop.xlane.xlu1 %1150 }
 0x6ec   :  { %v1154_v42 = vsub.f32 %v1138_v30, %v1148_v7  ;;  %v1155_v44 = vsub.f32 %v1139_v5, %v1151_v3 }
 0x6ee   :  { %v1418_v52 = vpop.eup %1417  ;;  %v1160_v19 = vmul.f32 1.442695, %v1154_v42  ;;  %v1162_v46 = vmul.f32 1.442695, %v1155_v44 }
 0x6ef   :  { %v1420_v48 = vpop.eup %1419  ;;  %v1164_v32 = vsel %vm183_vm2, %v1418_v52, 0.0 }
 0x6f0   :  { %1421 = vpow2.f32 %v1160_v19  ;;  %1165 = vadd.xlane.f32.xlu0 %v1164_v32  ;;  %v1167_v31 = vsel %vm183_vm2, %v1420_v48, 0.0 }
 0x6f1   :  { %1423 = vpow2.f32 %v1162_v46  ;;  %1168 = vadd.xlane.f32.xlu1 %v1167_v31 }
 0x6f6   :  { %v1422_v38 = vpop.eup %1421 }
 0x6f7   :  { %v1424_v47 = vpop.eup %1423  ;;  %v1170_v49 = vsel %vm183_vm2, %v1422_v38, 0.0 }
 0x6f8   :  { %1171 = vadd.xlane.f32.xlu0 %v1170_v49  ;;  %v1173_v24 = vsel %vm183_vm2, %v1424_v47, 0.0 }
 0x6f9   :  { %1174 = vadd.xlane.f32.xlu1 %v1173_v24 }
 0x763   :  { %v1166_v22 = vpop.xlane.xlu0 %1165 }
 0x764   :  { %1425 = vrcp.f32 %v1166_v22  ;;  %v1169_v51 = vpop.xlane.xlu1 %1168 }
 0x765   :  { %1427 = vrcp.f32 %v1169_v51 }
 0x76a   :  { %v1426_v53 = vpop.eup %1425 }
 0x76b   :  { %v1180_v10 = vmul.f32 %v1426_v53, %v1418_v52  ;;  %v1172_v16 = vpop.xlane.xlu0 %1171  ;;  %v1428_v15 = vpop.eup %1427 }
 0x76c   :  { %1429 = vrcp.f32 %v1172_v16  ;;  %v1181_v59 = vmul.f32 %v1428_v15, %v1420_v48  ;;  %v1175_v58 = vpop.xlane.xlu1 %1174 }
 0x76d   :  { %1298 = vmatmul.msk.f32.vlgmr.msrb.gmra.mxu2 %vm183_vm2, %v1180_v10  ;;  %1431 = vrcp.f32 %v1175_v58 }
 0x772   :  { %v1430_v25 = vpop.eup %1429 }
 0x773   :  { %v1182_v61 = vmul.f32 %v1430_v25, %v1422_v38  ;;  %v1432_v63 = vpop.eup %1431 }
 0x774   :  { %v1183_v43 = vmul.f32 %v1432_v63, %v1424_v47 }
 0x775   :  { %1299 = vmatmul.msk.f32.gmra.mxu2 %vm183_vm2, %v1181_v59 }
 0x77d   :  { %1300 = vmatmul.msk.f32.gmra.mxu2 %vm183_vm2, %v1182_v61 }
 0x785   :  { %1301 = vmatmul.msk.f32.gmra.mxu2 %vm183_vm2, %v1183_v43 }
 0x7f0   :  { %v1217_v40 = vpop.f32.mrf.mxu2 }
 0x7f1   :  { %v1218_v35 = vadd.f32 %v1350_v60, %v1217_v40 }
 0x7f3   :  { %1229 = vst.msk [vmem:[%s2062_s12] sm:$0xff] %vm104_vm1, %v1218_v35  ;;  %v1237_v1 = vmul.f32 %v1351_v62, %v1218_v35 }
 0x7f5   :  { %v1241_v2 = vsel %vm104_vm1, %v1237_v1, 0.0 }
 0x7f6   :  { %1242 = vadd.xlane.f32.xlu0 %v1241_v2 }
 0x7f8   :  { %v1220_v4 = vpop.f32.mrf.mxu2 }
 0x7f9   :  { %v1221_v23 = vadd.f32 %v1350_v60, %v1220_v4 }
 0x7fb   :  { %1230 = vst.msk [vmem:[%s2062_s12 + $0x8] sm:$0xff] %vm104_vm1, %v1221_v23  ;;  %v1238_v8 = vmul.f32 %v1351_v62, %v1221_v23 }
 0x7fd   :  { %v1244_v34 = vsel %vm104_vm1, %v1238_v8, 0.0 }
 0x7fe   :  { %1245 = vadd.xlane.f32.xlu1 %v1244_v34 }
 0x800   :  { %v1223_v9 = vpop.f32.mrf.mxu2 }
 0x801   :  { %v1224_v50 = vadd.f32 %v1350_v60, %v1223_v9 }
 0x803   :  { %1231 = vst.msk [vmem:[%s2062_s12 + $0x10] sm:$0xff] %vm104_vm1, %v1224_v50  ;;  %v1239_v6 = vmul.f32 %v1351_v62, %v1224_v50 }
 0x805   :  { %v1247_v13 = vsel %vm104_vm1, %v1239_v6, 0.0 }
 0x806   :  { %1248 = vadd.xlane.f32.xlu0 %v1247_v13 }
 0x808   :  { %v1226_v17 = vpop.f32.mrf.mxu2 }
 0x809   :  { %v1227_v14 = vadd.f32 %v1350_v60, %v1226_v17 }
 0x80b   :  { %1232 = vst.msk [vmem:[%s2062_s12 + $0x18] sm:$0xff] %vm104_vm1, %v1227_v14  ;;  %v1240_v18 = vmul.f32 %v1351_v62, %v1227_v14 }
 0x80d   :  { %v1250_v45 = vsel %vm104_vm1, %v1240_v18, 0.0 }
 0x80e   :  { %1251 = vadd.xlane.f32.xlu1 %v1250_v45 }
 0x869   :  { %v1243_v33 = vpop.xlane.xlu0 %1242 }
 0x86a   :  { %v1257_v57 = vadd.f32 %v1352_v21, %v1243_v33 }
 0x86c   :  { %1262 = vst.msk [vmem:[%s2063_s13] sm:$0xff] %vm1261_vm4, %v1257_v57 }
 0x871   :  { %v1246_v39 = vpop.xlane.xlu1 %1245 }
 0x872   :  { %v1258_v56 = vadd.f32 %v1352_v21, %v1246_v39 }
 0x874   :  { %1263 = vst.msk [vmem:[%s2063_s13 + $0x8] sm:$0xff] %vm1261_vm4, %v1258_v56 }
 0x879   :  { %v1249_v55 = vpop.xlane.xlu0 %1248 }
 0x87a   :  { %v1259_v28 = vadd.f32 %v1352_v21, %v1249_v55 }
 0x87c   :  { %1264 = vst.msk [vmem:[%s2063_s13 + $0x10] sm:$0xff] %vm1261_vm4, %v1259_v28 }
 0x881   :  { %v1252_v29 = vpop.xlane.xlu1 %1251 }
 0x882   :  { %v1260_v41 = vadd.f32 %v1352_v21, %v1252_v29 }
 0x884   :  { %1265 = vst.msk [vmem:[%s2063_s13 + $0x18] sm:$0xff] %vm1261_vm4, %v1260_v41 }

</bundles_post_ra>
